<compile_context>
chip_gen: v7x
topology: tpu7x:2x2x1
jax: 0.10.0
libtpu: 0.0.40
codegen_flags: <defaults>
</compile_context>

<pallas_src>
import functools

import jax
import jax.numpy as jnp
from jax.experimental import pallas as pl
from jax.experimental.pallas import tpu as pltpu


# ----------------------------------------------------------------------------
# Pallas kernel 1: flat GEMM (1x1 convs) + bias + optional residual adds + ReLU
# ----------------------------------------------------------------------------
def _matmul_kernel(*refs, relu, n_res):
    x_ref, w_ref, b_ref = refs[:3]
    res_refs = refs[3:3 + n_res]
    o_ref = refs[3 + n_res]
    acc = jnp.dot(x_ref[...], w_ref[...], preferred_element_type=jnp.float32)
    out = acc + b_ref[...]
    for r in res_refs:
        out = out + r[...].astype(jnp.float32)
    if relu:
        out = jnp.maximum(out, 0.0)
    o_ref[...] = out.astype(o_ref.dtype)


def _pick_tm(M):
    """Largest divisor of M <= 1024 that is a multiple of 8 and gives >=2 steps."""
    if M <= 16:
        return M
    cands = [t for t in range(8, min(M // 2, 1024) + 1, 8) if M % t == 0]
    if cands:
        return max(cands)
    return min(M, 256)  # partial last block is fine (rows are independent)


@functools.lru_cache(maxsize=None)
def _build_flat_matmul(M, K, N, relu, n_res, out_dtype_name):
    out_dtype = jnp.dtype(out_dtype_name)
    tm = _pick_tm(M)
    grid = (pl.cdiv(M, tm),)
    in_specs = [
        pl.BlockSpec((tm, K), lambda i: (i, 0)),   # activations (bf16)
        pl.BlockSpec((K, N), lambda i: (0, 0)),    # folded weights (bf16)
        pl.BlockSpec((1, N), lambda i: (0, 0)),    # folded bias (f32)
    ]
    for _ in range(n_res):
        in_specs.append(pl.BlockSpec((tm, N), lambda i: (i, 0)))
    out_specs = pl.BlockSpec((tm, N), lambda i: (i, 0))
    kernel = functools.partial(_matmul_kernel, relu=relu, n_res=n_res)
    call = pl.pallas_call(
        kernel,
        grid=grid,
        in_specs=in_specs,
        out_specs=out_specs,
        out_shape=jax.ShapeDtypeStruct((M, N), out_dtype),
        compiler_params=pltpu.CompilerParams(dimension_semantics=("parallel",)),
    )
    return jax.jit(call)


def flat_matmul(x, w, b, res_list, relu, out_dtype):
    M, K = x.shape
    N = w.shape[1]
    fn = _build_flat_matmul(int(M), int(K), int(N), bool(relu), len(res_list),
                            jnp.dtype(out_dtype).name)
    return fn(x, w, b, *res_list)


# ----------------------------------------------------------------------------
# Pallas kernel 2: k x k stride-1 conv on a row block + (k-1) halo rows.
# The taps are formed in-kernel (no HBM im2col); k in {3 (3x3/s1), 2 (3x3/s2
# rewritten on space-to-depth input)}.  Epilogue: bias + residual(s) + ReLU.
# ----------------------------------------------------------------------------
def _conv_halo_kernel(*refs, k, bh, Wo, relu, n_res):
    xm_ref = refs[0]
    halo_refs = refs[1:k]
    w_ref = refs[k]
    b_ref = refs[k + 1]
    res_refs = refs[k + 2:k + 2 + n_res]
    o_ref = refs[k + 2 + n_res]

    parts = [xm_ref[0]] + [h[0] for h in halo_refs]
    x = jnp.concatenate(parts, axis=0) if len(parts) > 1 else parts[0]
    C = x.shape[-1]
    N = w_ref.shape[-1]
    M = bh * Wo

    acc = None
    for kh in range(k):
        for kw in range(k):
            patch = x[kh:kh + bh, kw:kw + Wo, :].reshape(M, C)
            d = jnp.dot(patch, w_ref[kh * k + kw],
                        preferred_element_type=jnp.float32)
            acc = d if acc is None else acc + d
    out = acc + b_ref[...]
    for r in res_refs:
        out = out + r[0].reshape(M, N).astype(jnp.float32)
    if relu:
        out = jnp.maximum(out, 0.0)
    o_ref[0] = out.reshape(bh, Wo, N).astype(o_ref.dtype)


def _pick_bh(Ho, Wo, k):
    """Output-row block: divisor of Ho, ~1024 GEMM rows, prefer >=2 row blocks."""
    target = max(1, 1024 // max(Wo, 1))
    cands = [d for d in range(1, Ho + 1) if Ho % d == 0]
    pref = [d for d in cands if Ho // d >= 2]
    if pref:
        cands = pref
    le = [d for d in cands if d <= target]
    return max(le) if le else min(cands)


@functools.lru_cache(maxsize=None)
def _build_conv_halo(B, Ho, Wo, Hp, Wp, C, N, k, bh, relu, n_res, out_dtype_name):
    del Hp  # operand shape only; blocks do not depend on it
    out_dtype = jnp.dtype(out_dtype_name)
    grid = (B, Ho // bh)
    in_specs = [pl.BlockSpec((1, bh, Wp, C), lambda b, i: (b, i, 0, 0))]
    for j in range(k - 1):  # single-row halo blocks (element-exact offsets)
        in_specs.append(
            pl.BlockSpec((1, 1, Wp, C),
                         lambda b, i, j=j: (b, (i + 1) * bh + j, 0, 0)))
    in_specs.append(pl.BlockSpec((k * k, C, N), lambda b, i: (0, 0, 0)))  # weights
    in_specs.append(pl.BlockSpec((1, N), lambda b, i: (0, 0)))            # bias
    for _ in range(n_res):
        in_specs.append(pl.BlockSpec((1, bh, Wo, N), lambda b, i: (b, i, 0, 0)))
    out_specs = pl.BlockSpec((1, bh, Wo, N), lambda b, i: (b, i, 0, 0))
    kernel = functools.partial(_conv_halo_kernel, k=k, bh=bh, Wo=Wo,
                               relu=relu, n_res=n_res)
    call = pl.pallas_call(
        kernel,
        grid=grid,
        in_specs=in_specs,
        out_specs=out_specs,
        out_shape=jax.ShapeDtypeStruct((B, Ho, Wo, N), out_dtype),
        compiler_params=pltpu.CompilerParams(
            dimension_semantics=("parallel", "parallel")),
    )
    return jax.jit(call)


def conv_halo(xp, wk, bias, res_list, *, k, bh, Ho, Wo, relu, out_dtype):
    B, Hp, Wp, C = xp.shape
    N = wk.shape[-1]
    fn = _build_conv_halo(B, Ho, Wo, Hp, Wp, C, N, k, bh, bool(relu),
                          len(res_list), jnp.dtype(out_dtype).name)
    return fn(*([xp] * k), wk, bias, *res_list)


# ----------------------------------------------------------------------------
# Convolution wrapper (pad / space-to-depth are cheap one-time layout glue)
# ----------------------------------------------------------------------------
def conv_bn_act(x, layer, relu=True, res=None, out_dtype=jnp.bfloat16):
    wk, bias = layer["wk"], layer["bias"]
    if res is None:
        res_list = []
    elif isinstance(res, (list, tuple)):
        res_list = list(res)
    else:
        res_list = [res]
    B, H, W, C = x.shape
    cout = wk.shape[-1]

    if wk.ndim == 2:  # 1x1 stride-1 conv -> flat GEMM
        y = flat_matmul(x.reshape(B * H * W, C), wk, bias,
                        [r.reshape(B * H * W, cout) for r in res_list],
                        relu, out_dtype)
        return y.reshape(B, H, W, cout)

    xp = jnp.pad(x, ((0, 0), (1, 1), (1, 1), (0, 0)))
    if wk.shape[0] == 9:               # 3x3, stride 1
        k, Ho, Wo = 3, H, W
    else:                              # 3x3, stride 2 via space-to-depth (k=2)
        k = 2
        Ho, Wo = (H - 1) // 2 + 1, (W - 1) // 2 + 1
        if xp.shape[1] % 2:
            xp = jnp.pad(xp, ((0, 0), (0, 1), (0, 0), (0, 0)))
        if xp.shape[2] % 2:
            xp = jnp.pad(xp, ((0, 0), (0, 0), (0, 1), (0, 0)))
        Hp2, Wp2 = xp.shape[1] // 2, xp.shape[2] // 2
        xp = xp.reshape(B, Hp2, 2, Wp2, 2, C)
        xp = xp.transpose(0, 1, 3, 2, 4, 5).reshape(B, Hp2, Wp2, 4 * C)
    bh = _pick_bh(Ho, Wo, k)
    return conv_halo(xp, wk, bias, res_list, k=k, bh=bh, Ho=Ho, Wo=Wo,
                     relu=relu, out_dtype=out_dtype)


# ----------------------------------------------------------------------------
# Deterministic parameter construction (BN folded to weights + bias; bf16)
# ----------------------------------------------------------------------------
def _prepare_conv(w, scale, bias, stride):
    k, _, cin, cout = w.shape
    wf = (w * scale.reshape(1, 1, 1, cout)).astype(jnp.bfloat16)
    layer = {"bias": bias.reshape(1, cout).astype(jnp.float32)}
    if k == 1:
        assert stride == 1
        layer["wk"] = wf.reshape(cin, cout)
        return layer
    assert k == 3
    if stride == 1:
        layer["wk"] = wf.reshape(9, cin, cout)
    else:
        # stride-2 3x3 conv == stride-1 2x2 conv on the space-to-depth input
        w2 = jnp.zeros((2, 2, 2, 2, cin, cout), jnp.bfloat16)
        for da in range(2):
            for db in range(2):
                for p in range(2):
                    for q in range(2):
                        kh, kw = 2 * da + p, 2 * db + q
                        if kh < 3 and kw < 3:
                            w2 = w2.at[da, db, p, q].set(wf[kh, kw])
        layer["wk"] = w2.reshape(4, 4 * cin, cout)
    return layer


class ParamGen:
    def __init__(self, seed=0):
        self._key = jax.random.PRNGKey(seed)
        self._n = 0

    def _next(self):
        self._n += 1
        return jax.random.fold_in(self._key, self._n)

    def conv_bn(self, cin, cout, k=3, stride=1, conv_bias=False, bn=True):
        w = 0.1 * jax.random.normal(self._next(), (k, k, cin, cout), jnp.float32)
        w = w / float((k * k * cin) ** 0.5)
        cb = (0.05 * jax.random.normal(self._next(), (cout,), jnp.float32)
              if conv_bias else jnp.zeros((cout,), jnp.float32))
        if bn:
            gamma = 1.0 + 0.05 * jax.random.normal(self._next(), (cout,), jnp.float32)
            beta = 0.05 * jax.random.normal(self._next(), (cout,), jnp.float32)
            mean = jnp.zeros((cout,), jnp.float32)   # fresh running stats
            var = jnp.ones((cout,), jnp.float32)
            scale = gamma / jnp.sqrt(var + 1e-5)
            bias = (cb - mean) * scale + beta
        else:
            scale = jnp.ones((cout,), jnp.float32)
            bias = cb
        return _prepare_conv(w, scale, bias, stride)


def make_basic(pg, cin, cout):
    down = pg.conv_bn(cin, cout, 1) if cin != cout else None
    return {"conv1": pg.conv_bn(cin, cout, 3, 1),
            "conv2": pg.conv_bn(cout, cout, 3, 1),
            "downsample": down}


def make_bottleneck(pg, cin, planes):
    cout = planes * 4
    down = pg.conv_bn(cin, cout, 1) if cin != cout else None
    return {"conv1": pg.conv_bn(cin, planes, 1),
            "conv2": pg.conv_bn(planes, planes, 3, 1),
            "conv3": pg.conv_bn(planes, cout, 1),
            "downsample": down}


def make_hr_module(pg, num_branches, num_blocks, num_channels, multi_scale_output):
    branches = [[make_basic(pg, num_channels[i], num_channels[i])
                 for _ in range(num_blocks[i])] for i in range(num_branches)]
    fuse = []
    n_out = num_branches if multi_scale_output else 1
    for i in range(n_out):
        row = []
        for j in range(num_branches):
            if j > i:
                row.append({"conv": pg.conv_bn(num_channels[j], num_channels[i], 1)})
            elif j == i:
                row.append(None)
            else:
                chain = []
                for t in range(i - j):
                    last = (t == i - j - 1)
                    outc = num_channels[i] if last else num_channels[j]
                    chain.append(pg.conv_bn(num_channels[j], outc, 3, 2))
                row.append({"chain": chain})
        fuse.append(row)
    return {"branches": branches, "fuse": fuse}


def make_transition(pg, pre, cur):
    layers = []
    for i in range(len(cur)):
        if i < len(pre):
            layers.append([pg.conv_bn(pre[i], cur[i], 3, 1)]
                          if cur[i] != pre[i] else None)
        else:
            chain = []
            for j in range(i + 1 - len(pre)):
                inc = pre[-1]
                outc = cur[i] if j == i - len(pre) else inc
                chain.append(pg.conv_bn(inc, outc, 3, 2))
            layers.append(chain)
    return layers


def make_backbone(pg):
    bp = {"conv1": pg.conv_bn(3, 64, 3, 2), "conv2": pg.conv_bn(64, 64, 3, 2)}
    layer1 = [make_bottleneck(pg, 64, 64)]
    for _ in range(3):
        layer1.append(make_bottleneck(pg, 256, 64))
    bp["layer1"] = layer1
    bp["transition1"] = make_transition(pg, [256], [32, 64])
    bp["stage2"] = [make_hr_module(pg, 2, [4, 4], [32, 64], True)]
    bp["transition2"] = make_transition(pg, [32, 64], [32, 64, 128])
    bp["stage3"] = [make_hr_module(pg, 3, [4, 4, 4], [32, 64, 128], True)
                    for _ in range(4)]
    bp["transition3"] = make_transition(pg, [32, 64, 128], [32, 64, 128, 256])
    bp["stage4"] = [make_hr_module(pg, 4, [4, 4, 4, 4], [32, 64, 128, 256],
                                   multi_scale_output=(m != 2)) for m in range(3)]
    return bp


def _fuse_block_diag_conv(convs):
    """Stack independent per-head convs into one block-diagonal conv."""
    k2, cin, cout = convs[0]["wk"].shape
    n = len(convs)
    wk = jnp.zeros((k2, n * cin, n * cout), jnp.bfloat16)
    for t, c in enumerate(convs):
        wk = wk.at[:, t * cin:(t + 1) * cin, t * cout:(t + 1) * cout].set(c["wk"])
    bias = jnp.concatenate([c["bias"] for c in convs], axis=-1)
    return {"wk": wk, "bias": bias}


def make_heads(pg, in_ch):
    # The three ROMP heads (params / center / cam) share the same 34-ch input
    # and identical structure -> run them fused along the channel dim:
    #   conv0 (3x3/s2): plain channel concat -> one N=192 GEMM (shared input).
    #   2 BasicBlocks:  block-diagonal 192-ch convs (heads stay independent).
    #   final 1x1:      one block-diagonal 192x146 GEMM, output columns ordered
    #                   [cam(3) | params(142) | center(1)] so params_maps is a
    #                   plain slice and the final store is lane-dense.
    conv0s = [pg.conv_bn(in_ch, 64, 3, 2, conv_bias=True, bn=True) for _ in range(3)]
    conv0 = {"wk": jnp.concatenate([c["wk"] for c in conv0s], axis=-1),
             "bias": jnp.concatenate([c["bias"] for c in conv0s], axis=-1)}

    # Fused channel order: [params-head (0:64) | center-head (64:128) | cam-head (128:192)]
    per_head_blocks = [[make_basic(pg, 64, 64) for _ in range(2)] for _ in range(3)]
    fused_blocks = []
    for b in range(2):
        fused_blocks.append({
            "conv1": _fuse_block_diag_conv(
                [per_head_blocks[h][b]["conv1"] for h in range(3)]),
            "conv2": _fuse_block_diag_conv(
                [per_head_blocks[h][b]["conv2"] for h in range(3)]),
            "downsample": None,
        })

    f_params = pg.conv_bn(64, 142, 1, 1, conv_bias=True, bn=False)  # NUM_PARAMS_MAP
    f_center = pg.conv_bn(64, 1, 1, 1, conv_bias=True, bn=False)    # NUM_CENTER_MAP
    f_cam = pg.conv_bn(64, 3, 1, 1, conv_bias=True, bn=False)       # NUM_CAM_MAP
    wf = jnp.zeros((192, 146), jnp.float32)
    wf = wf.at[0:64, 3:145].set(f_params["wk"].astype(jnp.float32))
    wf = wf.at[64:128, 145:146].set(f_center["wk"].astype(jnp.float32))
    wf = wf.at[128:192, 0:3].set(f_cam["wk"].astype(jnp.float32))
    bf = jnp.zeros((1, 146), jnp.float32)
    bf = bf.at[:, 3:145].set(f_params["bias"])
    bf = bf.at[:, 145:146].set(f_center["bias"])
    bf = bf.at[:, 0:3].set(f_cam["bias"])
    final = {"wk": wf.astype(jnp.bfloat16), "bias": bf}

    return {"conv0": conv0, "blocks": fused_blocks, "final": final}


# ----------------------------------------------------------------------------
# Forward pass (mirrors the PyTorch module structure)
# ----------------------------------------------------------------------------
def basic_block(x, p):
    residual = (x if p["downsample"] is None
                else conv_bn_act(x, p["downsample"], relu=False))
    out = conv_bn_act(x, p["conv1"], relu=True)
    out = conv_bn_act(out, p["conv2"], relu=True, res=[residual])
    return out


def bottleneck(x, p):
    residual = (x if p["downsample"] is None
                else conv_bn_act(x, p["downsample"], relu=False))
    out = conv_bn_act(x, p["conv1"], relu=True)
    out = conv_bn_act(out, p["conv2"], relu=True)
    out = conv_bn_act(out, p["conv3"], relu=True, res=[residual])
    return out


def _upsample_nearest(y, f):
    return jnp.repeat(jnp.repeat(y, f, axis=1), f, axis=2)


def _apply_fuse(entry, xj, i, j):
    if j > i:  # 1x1 conv (no relu) then nearest upsample
        y = conv_bn_act(xj, entry["conv"], relu=False)
        return _upsample_nearest(y, 2 ** (j - i))
    y = xj     # j < i: chain of stride-2 convs, relu on all but the last
    chain = entry["chain"]
    for t, conv in enumerate(chain):
        y = conv_bn_act(y, conv, relu=(t != len(chain) - 1))
    return y


def _apply_fuse_folded(entry, xj, extra_res):
    # j=0 down-chain whose last conv absorbs the fuse-sum + post-sum ReLU.
    chain = entry["chain"]
    y = xj
    for t, conv in enumerate(chain):
        if t == len(chain) - 1:
            y = conv_bn_act(y, conv, relu=True, res=extra_res)
        else:
            y = conv_bn_act(y, conv, relu=True)
    return y


def hr_module_forward(xs, mp):
    nb = len(mp["branches"])
    xs = list(xs)
    for i in range(nb):
        y = xs[i]
        for blk in mp["branches"][i]:
            y = basic_block(y, blk)
        xs[i] = y
    outs = []
    for i, row in enumerate(mp["fuse"]):
        if i == 0:
            # TODO(synk): the i==0 fuse-sum (+ReLU) stays as XLA glue since its
            # incoming terms end in an upsample, not a conv epilogue.
            y = xs[0].astype(jnp.float32)
            for j in range(1, nb):
                y = y + _apply_fuse(row[j], xs[j], i, j).astype(jnp.float32)
            outs.append(jax.nn.relu(y).astype(jnp.bfloat16))
        else:
            extras = [xs[i]]
            for j in range(1, nb):
                if j != i:
                    extras.append(_apply_fuse(row[j], xs[j], i, j))
            outs.append(_apply_fuse_folded(row[0], xs[0], extras))
    return outs


def apply_transition(chain, x):
    for conv in chain:
        x = conv_bn_act(x, conv, relu=True)
    return x


def backbone_forward(x, bp):
    x = conv_bn_act(x, bp["conv1"], relu=True)
    x = conv_bn_act(x, bp["conv2"], relu=True)
    for blk in bp["layer1"]:
        x = bottleneck(x, blk)
    # stage 2
    x_list = []
    for i in range(2):
        t = bp["transition1"][i]
        x_list.append(x if t is None else apply_transition(t, x))
    y_list = x_list
    for mp in bp["stage2"]:
        y_list = hr_module_forward(y_list, mp)
    # stage 3
    x_list = []
    for i in range(3):
        t = bp["transition2"][i]
        x_list.append(y_list[i] if t is None else apply_transition(t, y_list[-1]))
    y_list = x_list
    for mp in bp["stage3"]:
        y_list = hr_module_forward(y_list, mp)
    # stage 4
    x_list = []
    for i in range(4):
        t = bp["transition3"][i]
        x_list.append(y_list[i] if t is None else apply_transition(t, y_list[-1]))
    y_list = x_list
    for mp in bp["stage4"]:
        y_list = hr_module_forward(y_list, mp)
    return y_list[0]


def get_coord_maps_nhwc(size):
    r = jnp.arange(size, dtype=jnp.float32) / (size - 1) * 2.0 - 1.0
    xx = jnp.broadcast_to(r[None, :], (size, size))  # varies along width  (ch 0)
    yy = jnp.broadcast_to(r[:, None], (size, size))  # varies along height (ch 1)
    return jnp.stack([xx, yy], axis=-1)[None]        # (1, size, size, 2)


def romp_forward(image, params):
    # image: (B, H, W, 3) BHWC, values in [0, 255] (same as the PyTorch input
    # before BHWC_to_BCHW).  Normalization matches `x/255*2-1`.
    x = ((image.astype(jnp.float32) / 255.0) * 2.0 - 1.0).astype(jnp.bfloat16)
    x = backbone_forward(x, params["backbone"])            # (B, H/4, W/4, 32)
    B, Hb, Wb, _ = x.shape
    # TODO(synk): the PyTorch module hardcodes get_coord_maps(128) (for 512x512
    # inputs); coord maps are generated at the backbone output resolution here
    # so small test shapes remain valid.
    coord = get_coord_maps_nhwc(Hb).astype(jnp.bfloat16)
    x = jnp.concatenate([x, jnp.broadcast_to(coord, (B, Hb, Wb, 2))], axis=-1)

    heads = params["heads"]
    y = conv_bn_act(x, heads["conv0"], relu=True)           # fused 3-head conv0
    for blk in heads["blocks"]:                             # fused block-diag tails
        y = basic_block(y, blk)
    out = conv_bn_act(y, heads["final"], relu=False,
                      out_dtype=jnp.float32)                # (B, h, w, 146) f32
    out = out.at[..., 0].set(jnp.power(1.1, out[..., 0]))   # cam channel 0
    params_maps = out[..., 0:145]                           # [cam(3) | params(142)]
    center_maps = out[..., 145:146]
    # Convert to NCHW to match the PyTorch output convention.
    return (jnp.transpose(center_maps, (0, 3, 1, 2)),
            jnp.transpose(params_maps, (0, 3, 1, 2)))


if __name__ == "__main__":
    key = jax.random.PRNGKey(0)
    B, H, W = 2, 64, 64
    image = jax.random.uniform(key, (B, H, W, 3), jnp.float32, 0.0, 255.0)

    pg = ParamGen(seed=0)
    params = {
        "backbone": make_backbone(pg),
        "heads": make_heads(pg, 34),   # 32 backbone channels + 2 coord channels
    }

    center_maps, params_maps = romp_forward(image, params)
    center_maps, params_maps = jax.block_until_ready((center_maps, params_maps))

    assert center_maps.shape == (B, 1, H // 8, W // 8), center_maps.shape
    assert params_maps.shape == (B, 145, H // 8, W // 8), params_maps.shape
    assert bool(jnp.all(jnp.isfinite(center_maps)))
    assert bool(jnp.all(jnp.isfinite(params_maps)))
    print("KERNEL_OK")
</pallas_src>

<mosaic_0001>
module attributes {stable_mosaic.version = 11 : i64} {
  func.func @_conv_halo_kernel(%arg0: i32, %arg1: i32, %arg2: memref<1x16x33x12xbf16, #tpu.memory_space<vmem>>, %arg3: memref<1x1x33x12xbf16, #tpu.memory_space<vmem>>, %arg4: memref<4x12x64xbf16, #tpu.memory_space<vmem>>, %arg5: memref<1x64xf32, #tpu.memory_space<vmem>>, %arg6: memref<1x16x32x64xbf16, #tpu.memory_space<vmem>>) attributes {dimension_semantics = [#tpu.dimension_semantics<parallel>, #tpu.dimension_semantics<parallel>], iteration_bounds = array<i64: 2, 2>, scalar_prefetch = 0 : i64, scratch_operands = 0 : i64, tpu.core_type = #tpu.core_type<tc>, window_params = [{transform_indices = @transform_0, window_bounds = array<i64: 1, 16, 33, 12>}, {transform_indices = @transform_1, window_bounds = array<i64: 1, 1, 33, 12>}, {pipeline_mode = #tpu.pipeline_mode<synchronous>, transform_indices = @transform_2, window_bounds = array<i64: 4, 12, 64>}, {pipeline_mode = #tpu.pipeline_mode<synchronous>, transform_indices = @transform_3, window_bounds = array<i64: 1, 64>}, {transform_indices = @transform_4, window_bounds = array<i64: 1, 16, 32, 64>}]} {
    %c0 = arith.constant 0 : index
    %c0_0 = arith.constant 0 : index
    %c0_1 = arith.constant 0 : index
    %c0_2 = arith.constant 0 : index
    %0 = vector.load %arg2[%c0, %c0_0, %c0_1, %c0_2] : memref<1x16x33x12xbf16, #tpu.memory_space<vmem>>, vector<1x16x33x12xbf16>
    %1 = vector.shape_cast %0 : vector<1x16x33x12xbf16> to vector<16x33x12xbf16>
    %c0_3 = arith.constant 0 : index
    %c0_4 = arith.constant 0 : index
    %c0_5 = arith.constant 0 : index
    %c0_6 = arith.constant 0 : index
    %2 = vector.load %arg3[%c0_3, %c0_4, %c0_5, %c0_6] : memref<1x1x33x12xbf16, #tpu.memory_space<vmem>>, vector<1x1x33x12xbf16>
    %3 = vector.shape_cast %2 : vector<1x1x33x12xbf16> to vector<1x33x12xbf16>
    %4 = tpu.concatenate %1, %3 in 0 : vector<16x33x12xbf16>, vector<1x33x12xbf16> -> vector<17x33x12xbf16>
    %5 = vector.extract_strided_slice %4 {offsets = [0, 0, 0], sizes = [16, 32, 12], strides = [1, 1, 1]} : vector<17x33x12xbf16> to vector<16x32x12xbf16>
    %6 = vector.shape_cast %5 : vector<16x32x12xbf16> to vector<512x12xbf16>
    %c0_7 = arith.constant 0 : index
    %c0_8 = arith.constant 0 : index
    %c0_9 = arith.constant 0 : index
    %7 = vector.load %arg4[%c0_7, %c0_8, %c0_9] : memref<4x12x64xbf16, #tpu.memory_space<vmem>>, vector<1x12x64xbf16>
    %8 = vector.shape_cast %7 : vector<1x12x64xbf16> to vector<12x64xbf16>
    %cst = arith.constant dense<0.000000e+00> : vector<512x64xf32>
    %9 = tpu.matmul %6, %8, %cst {dimension_numbers = #tpu.dot_dimension_numbers<[1], [0], [0], [1], [0, 0, 1, 1], [], []>} : vector<512x12xbf16>, vector<12x64xbf16>, vector<512x64xf32> -> vector<512x64xf32>
    %10 = vector.extract_strided_slice %4 {offsets = [0, 1, 0], sizes = [16, 32, 12], strides = [1, 1, 1]} : vector<17x33x12xbf16> to vector<16x32x12xbf16>
    %11 = vector.shape_cast %10 : vector<16x32x12xbf16> to vector<512x12xbf16>
    %c1 = arith.constant 1 : index
    %c0_10 = arith.constant 0 : index
    %c0_11 = arith.constant 0 : index
    %12 = vector.load %arg4[%c1, %c0_10, %c0_11] : memref<4x12x64xbf16, #tpu.memory_space<vmem>>, vector<1x12x64xbf16>
    %13 = vector.shape_cast %12 : vector<1x12x64xbf16> to vector<12x64xbf16>
    %cst_12 = arith.constant dense<0.000000e+00> : vector<512x64xf32>
    %14 = tpu.matmul %11, %13, %cst_12 {dimension_numbers = #tpu.dot_dimension_numbers<[1], [0], [0], [1], [0, 0, 1, 1], [], []>} : vector<512x12xbf16>, vector<12x64xbf16>, vector<512x64xf32> -> vector<512x64xf32>
    %15 = arith.addf %9, %14 : vector<512x64xf32>
    %16 = vector.extract_strided_slice %4 {offsets = [1, 0, 0], sizes = [16, 32, 12], strides = [1, 1, 1]} : vector<17x33x12xbf16> to vector<16x32x12xbf16>
    %17 = vector.shape_cast %16 : vector<16x32x12xbf16> to vector<512x12xbf16>
    %c2 = arith.constant 2 : index
    %c0_13 = arith.constant 0 : index
    %c0_14 = arith.constant 0 : index
    %18 = vector.load %arg4[%c2, %c0_13, %c0_14] : memref<4x12x64xbf16, #tpu.memory_space<vmem>>, vector<1x12x64xbf16>
    %19 = vector.shape_cast %18 : vector<1x12x64xbf16> to vector<12x64xbf16>
    %cst_15 = arith.constant dense<0.000000e+00> : vector<512x64xf32>
    %20 = tpu.matmul %17, %19, %cst_15 {dimension_numbers = #tpu.dot_dimension_numbers<[1], [0], [0], [1], [0, 0, 1, 1], [], []>} : vector<512x12xbf16>, vector<12x64xbf16>, vector<512x64xf32> -> vector<512x64xf32>
    %21 = arith.addf %15, %20 : vector<512x64xf32>
    %22 = vector.extract_strided_slice %4 {offsets = [1, 1, 0], sizes = [16, 32, 12], strides = [1, 1, 1]} : vector<17x33x12xbf16> to vector<16x32x12xbf16>
    %23 = vector.shape_cast %22 : vector<16x32x12xbf16> to vector<512x12xbf16>
    %c3 = arith.constant 3 : index
    %c0_16 = arith.constant 0 : index
    %c0_17 = arith.constant 0 : index
    %24 = vector.load %arg4[%c3, %c0_16, %c0_17] : memref<4x12x64xbf16, #tpu.memory_space<vmem>>, vector<1x12x64xbf16>
    %25 = vector.shape_cast %24 : vector<1x12x64xbf16> to vector<12x64xbf16>
    %cst_18 = arith.constant dense<0.000000e+00> : vector<512x64xf32>
    %26 = tpu.matmul %23, %25, %cst_18 {dimension_numbers = #tpu.dot_dimension_numbers<[1], [0], [0], [1], [0, 0, 1, 1], [], []>} : vector<512x12xbf16>, vector<12x64xbf16>, vector<512x64xf32> -> vector<512x64xf32>
    %27 = arith.addf %21, %26 : vector<512x64xf32>
    %c0_19 = arith.constant 0 : index
    %c0_20 = arith.constant 0 : index
    %28 = vector.load %arg5[%c0_19, %c0_20] : memref<1x64xf32, #tpu.memory_space<vmem>>, vector<1x64xf32>
    %29 = vector.broadcast %28 : vector<1x64xf32> to vector<512x64xf32>
    %30 = arith.addf %27, %29 : vector<512x64xf32>
    %cst_21 = arith.constant 0.000000e+00 : f32
    %31 = vector.broadcast %cst_21 : f32 to vector<512x64xf32>
    %32 = arith.maximumf %30, %31 : vector<512x64xf32>
    %33 = vector.shape_cast %32 : vector<512x64xf32> to vector<16x32x64xf32>
    %34 = arith.truncf %33 : vector<16x32x64xf32> to vector<16x32x64xbf16>
    %c0_22 = arith.constant 0 : index
    %c0_23 = arith.constant 0 : index
    %c0_24 = arith.constant 0 : index
    %c0_25 = arith.constant 0 : index
    %35 = vector.load %arg6[%c0_22, %c0_23, %c0_24, %c0_25] : memref<1x16x32x64xbf16, #tpu.memory_space<vmem>>, vector<1x16x32x64xbf16>
    %36 = vector.shape_cast %35 : vector<1x16x32x64xbf16> to vector<16x32x64xbf16>
    %37 = vector.shape_cast %34 : vector<16x32x64xbf16> to vector<1x16x32x64xbf16>
    tpu.vector_store %arg6[%c0_22, %c0_23, %c0_24, %c0_25], %37 {strides = array<i32>} : memref<1x16x32x64xbf16, #tpu.memory_space<vmem>>, vector<1x16x32x64xbf16>,
    return
  }
  func.func @transform_0(%arg0: i32, %arg1: i32) -> (i32, i32, i32, i32) {
    %c0_i32 = arith.constant 0 : i32
    %c0_i32_0 = arith.constant 0 : i32
    %c0_i32_1 = arith.constant 0 : i32
    return %arg0, %arg1, %c0_i32, %c0_i32_0 : i32, i32, i32, i32
  }
  func.func @transform_1(%arg0: i32, %arg1: i32) -> (i32, i32, i32, i32) {
    %c1_i32 = arith.constant 1 : i32
    %0 = arith.addi %arg1, %c1_i32 : i32
    %c16_i32 = arith.constant 16 : i32
    %1 = arith.muli %0, %c16_i32 : i32
    %c0_i32 = arith.constant 0 : i32
    %2 = arith.addi %1, %c0_i32 : i32
    %c0_i32_0 = arith.constant 0 : i32
    %c0_i32_1 = arith.constant 0 : i32
    %c0_i32_2 = arith.constant 0 : i32
    return %arg0, %2, %c0_i32_0, %c0_i32_1 : i32, i32, i32, i32
  }
  func.func @transform_2(%arg0: i32, %arg1: i32) -> (i32, i32, i32) {
    %c0_i32 = arith.constant 0 : i32
    %c0_i32_0 = arith.constant 0 : i32
    %c0_i32_1 = arith.constant 0 : i32
    %c0_i32_2 = arith.constant 0 : i32
    return %c0_i32, %c0_i32_0, %c0_i32_1 : i32, i32, i32
  }
  func.func @transform_3(%arg0: i32, %arg1: i32) -> (i32, i32) {
    %c0_i32 = arith.constant 0 : i32
    %c0_i32_0 = arith.constant 0 : i32
    %c0_i32_1 = arith.constant 0 : i32
    return %c0_i32, %c0_i32_0 : i32, i32
  }
  func.func @transform_4(%arg0: i32, %arg1: i32) -> (i32, i32, i32, i32) {
    %c0_i32 = arith.constant 0 : i32
    %c0_i32_0 = arith.constant 0 : i32
    %c0_i32_1 = arith.constant 0 : i32
    return %arg0, %arg1, %c0_i32, %c0_i32_0 : i32, i32, i32, i32
  }
}

</mosaic_0001>

<bundles_post_ra>
// kernel: tpu_custom_call.1
= control target key start
LH: loop header
LB: loop body
LE: loop exit
PB: predicated region body
PF: predicated region fallthrough
CT: control target
= control target key end

     0   :  { %9 = vsyncpa [#allocation3], 0  ;;  %s6251_s0 = inlined_call_operand.vmem [shape: bf16[2,33,33,12], index: 0, kind: input, shape index: {}]   ;;  %s6252_s1 = inlined_call_operand.vmem [shape: bf16[2,33,33,12], index: 1, kind: input, shape index: {}]   ;;  %s6253_s2 = inlined_call_operand.vmem [shape: bf16[4,12,64], index: 2, kind: input, shape index: {}]   ;;  %s6254_s3 = inlined_call_operand.vmem [shape: f32[1,64], index: 3, kind: input, shape index: {}]   ;;  %s6255_s4 = inlined_call_operand.hbm [shape: bf16[2,32,32,64], index: 4, kind: output, shape index: {}]  }
   0x1   :  { %11 = vsyncpa [#allocation3 + $0x1], 0  ;;  %s4717_s15 = smov 0   ;;  %s4719_s16 = smov 0  }
   0x2   :  { %s4721_s17 = smov 0   ;;  %s4723_s18 = smov 0  }
   0x3   :  { %s4725_s19 = smov 0   ;;  %s4727_s20 = smov 0  }
   0x4   :  { %s4729_s21 = smov 0   ;;  %s4731_s22 = smov 0  }
   0x5 LB: > { %s3524_s23 = sadd.s32 4294967295, %s4687_s22   ;;  %s3525_s24 = sadd.s32 4294967294, %s4687_s22   ;;  %s4687_s22 = sphi %s4731_s22, %s17_s22   ;;  %s4683_s21 = sphi %s4729_s21, %s6369_s21   ;;  %s4679_s20 = sphi %s4727_s20, %s6368_s20   ;;  %s4675_s19 = sphi %s4725_s19, %s6367_s19   ;;  %s4671_s18 = sphi %s4723_s18, %s6366_s18   ;;  %s4667_s17 = sphi %s4721_s17, %s6365_s17   ;;  %s4663_s16 = sphi %s4719_s16, %s6364_s16   ;;  %s4659_s15 = sphi %s4717_s15, %s6363_s15  }
   0x6   : > { %s26_s25 = sadd.s32 1, %s4679_s20  ;;  %s29_s26 = sadd.s32 1, %s4683_s21 }
   0x7   : > { %p27_p0 = scmp.ge.s32.totalorder %s26_s25, 2  ;;  %p150_p1 = scmp.ne.s32.totalorder %s4667_s17, %s4663_s16 }
   0x8   : > { %p151_p2 = scmp.eq.s32.totalorder %s3524_s23, 3  ;;  %p156_p5 = scmp.ne.s32.totalorder %s4663_s16, %s4659_s15 }
   0x9   : > { %s6371_s25 = smov (%p27_p0, %s26_s25), 0  ;;  %s6373_s26 = smov (!%p27_p0, %s29_s26), %s4683_s21 }
   0xa   : > { %6290 = sst [smem:[#allocation5_spill]] %s6371_s25  ;;  %s136_s27 = ssub.s32 %s4679_s20, %s6371_s25 }
   0xb   : > { %p4768_p3 = por %p151_p2, %p150_p1  ;;  %p31_p4 = scmp.ge.s32.totalorder %s6373_s26, 2 }
   0xc   : > { %p157_p6 = scmp.eq.s32.totalorder %s3525_s24, 3  ;;  %p3530_p7 = scmp.ge.s32.totalorder %s4687_s22, 1 }
   0xd   : > { %s6375_s26 = smov (%p31_p4, %s6373_s26), 0  ;;  %p221_p9 = scmp.lt.s32.totalorder %s4687_s22, 5 }
   0xe   : > { %6292 = sst [smem:[#allocation6_spill]] %s6375_s26  ;;  %p4777_p8 = por %p157_p6, %p156_p5 }
   0xf   : > { %s135_s30 = ssub.s32 %s4683_s21, %s6375_s26  ;;  %s140_s5 = sadd.s32 1, %s4667_s17 }
  0x10   : > { %s137_s6 = sor.u32 %s136_s27, %s135_s30  ;;  %p222_p10 = pnand %p3530_p7, %p221_p9 }
  0x11   : > { %p138_p11 = scmp.eq.s32.totalorder %s137_s6, 0 }
  0x12   : > { %225 = sbr.rel (%p222_p10) target bundleno = 551 (0x227), region = 36 }
  0x13   : > { %s4786_s7 = scalar_select %p138_p11, %s4667_s17, %s140_s5  }
  0x19   : > { %vm1299_vm0 = vcmask 1045504   ;;  %s4789_s8 = sshll.u32 %s4671_s18, 4  ;;  %v4553_v0 = vld [vmem:[%s6253_s2 + $0x10] sm:$0x3f]   ;;  %p274_p12 = scmp.lt.s32.totalorder %s4675_s19, 1  ;;  %vm1202_vm1 = vcmask 97280  }
  0x1a   : > { %p276_p13 = scmp.lt.s32.totalorder %s4789_s8, 32  ;;  %v4556_v1 = vld [vmem:[%s6253_s2 + $0x8] sm:$0x3f]   ;;  %4475 = vmatprep.subr.msk.bf16.mxu0 %vm1299_vm0, %v4553_v0  ;;  %v2170_v2 = vsel %vm1299_vm0, %v4553_v0, 0  ;;  %v4559_v4 = vld [vmem:[%s6253_s2] sm:$0x3f]  }
  0x1b   : > { %s4802_s13 = scalar_select %p274_p12, %s4675_s19, 1  ;;  %4150 = vmatpush3.bf16.msra.mxu0 %v2170_v2  ;;  %4473 = vmatprep.subr.msk.bf16.mxu1 %vm1299_vm0, %v4556_v1  ;;  %v1301_v3 = vsel %vm1299_vm0, %v4556_v1, 0  ;;  %v4561_v5 = vld [vmem:[%s6253_s2 + $0x18] sm:$0x3f]   ;;  %v4825_v6 = vsel %vm1299_vm0, %v4559_v4, 0  ;;  %vm3336_vm5 = vcmask 519168  }
  0x1c   : > { %s277_s14 = scalar_select %p276_p13, %s4789_s8, 32  ;;  %4018 = vmatpush3.bf16.msra.mxu1 %v1301_v3  ;;  %4476 = vmatprep.subr.msk.bf16.mxu0 %vm1299_vm0, %v4561_v5  ;;  %v2590_v7 = vsel %vm1299_vm0, %v4561_v5, 0  ;;  %vm391_vm2 = vsmask.f32 3328  ;;  %vm392_vm3 = vsmask.f32 7440 }
  0x1d   : > { %s4478_s23 = smul.u32 165, %s4802_s13  ;;  %4474 = vmatprep.subr.msk.bf16.mxu1 %vm1299_vm0, %v4559_v4  ;;  %s3819_s11 = sadd.s32 16, %s4789_s8  ;;  %vm4897_vm4 = vmor %vm391_vm2, %vm392_vm3 }
  0x1e   : > { %s4477_s30 = smul.u32 5, %s277_s14  ;;  %p293_p0 = scmp.lt.s32.totalorder %s3819_s11, 32 }
  0x20   : > { %s280_s9 = sadd.s32 %s4478_s23, %s4477_s30  ;;  %s6377_s11 = smov (!%p293_p0, %s3819_s11), 32 }
  0x21   : > { %s3533_s10 = sshll.u32 %s280_s9, 2  ;;  %s4479_s26 = smul.u32 5, %s6377_s11 }
  0x22   : > { %s4822_s25 = scalar_lea.vmem %s6251_s0, %s3533_s10  ;;  %s3884_s9 = sshll.u32 %s4671_s18, 6 }
  0x23   : > { %v309_v8 = vld [vmem:[%s4822_s25 + $0x14] sm:$0xf]  ;;  %v310_v9 = vld [vmem:[%s4822_s25 + $0x18] sm:$0xf]  ;;  %v311_v10 = vld [vmem:[%s4822_s25 + $0x1c] sm:$0xf]  ;;  %s4867_s8 = sadd.s32 %s4479_s26, %s4478_s23 }
  0x24   : > { %v439_v11 = vshrl.u32 %v309_v8, 16  ;;  %v442_v12 = vshll.u32 %v309_v8, 16  ;;  %v448_v13 = vshll.u32 %v310_v9, 16  ;;  %v452_v14 = vshrl.u32 %v310_v9, 16  ;;  %v312_v15 = vld [vmem:[%s4822_s25 + $0x20] sm:$0xf] }
  0x25   : > { %v4832_v16 = vcombine.low %v309_v8, %v310_v9  ;;  %v458_v17 = vshll.u32 %v311_v10, 16  ;;  %v462_v18 = vshrl.u32 %v311_v10, 16  ;;  %v468_v19 = vshll.u32 %v312_v15, 16  ;;  %v314_v24 = vld [vmem:[%s4822_s25 + $0x28] sm:$0xf]  ;;  %s3535_s13 = sshll.u32 %s4867_s8, 2 }
  0x26   : > { %v441_v20 = vrot.slane %v439_v11, 4  ;;  %v444_v21 = vrot.slane %v442_v12, 5  ;;  %v4836_v22 = vrot.slane %v448_v13, 5  ;;  %v454_v23 = vrot.slane %v452_v14, 4  ;;  %v315_v29 = vld [vmem:[%s4822_s25 + $0x2c] sm:$0xf]  ;;  %s5588_s24 = scalar_lea.vmem %s6252_s1, %s3535_s13 }
  0x27   : > { %4151 = vmatprep.mubr.msk.bf16.mxu0 %vm1202_vm1, %v4832_v16  ;;  %v4841_v25 = vrot.slane %v458_v17, 5  ;;  %v4843_v26 = vrot.slane %v462_v18, 4  ;;  %v4845_v27 = vrot.slane %v468_v19, 5  ;;  %v472_v28 = vshrl.u32 %v312_v15, 16  ;;  %v304_v34 = vld [vmem:[%s4822_s25] sm:$0xf] }
  0x28   : > { %v445_v30 = vor.u32 %v444_v21, %v441_v20  ;;  %v455_v31 = vor.u32 %v454_v23, %v4836_v22  ;;  %v4849_v32 = vcombine.low %v311_v10, %v312_v15  ;;  %v483_v33 = vshrl.u32 %v314_v24, 16  ;;  %v305_v37 = vld [vmem:[%s4822_s25 + $0x4] sm:$0xf]  ;;  %v4857_v38 = vld [vmem:[%s4822_s25 + $0x8] sm:$0xf]  ;;  %s3810_s10 = sshll.u32 %s4675_s19, 7 }
  0x29   : > { %v4853_v35 = vrot.slane %v472_v28, 4  ;;  %v486_v36 = vshll.u32 %v314_v24, 16  ;;  %v492_v40 = vshll.u32 %v315_v29, 16  ;;  %v496_v41 = vshrl.u32 %v315_v29, 16  ;;  %v4876_v46 = vld [vmem:[%s4822_s25 + $0xc] sm:$0xf]  ;;  %s3415_s18 = sadd.s32 %s3884_s9, %s3810_s10 }
  0x2a   : > { %v4859_v39 = vrot.slane %v445_v30, 4  ;;  %4152 = vmatmul.mubr.msk.bf16.vlgmr.msra.gmra.mrb[0].mxu0 %vm1202_vm1, %v4849_v32  ;;  %v4863_v42 = vcombine.low %v314_v24, %v315_v29  ;;  %v4869_v43 = vrot.slane %v455_v31, 4  ;;  %v4871_v44 = vrot.slane %v483_v33, 4  ;;  %v316_v52 = vld [vmem:[%s4822_s25 + $0x30] sm:$0xf]  ;;  %s3811_s19 = sshll.u32 %s3415_s18, 6 }
  0x2b   : > { %v4873_v45 = vrot.slane %v486_v36, 5  ;;  %v395_v47 = vshrl.u32 %v304_v34, 16  ;;  %4216 = vmatpush3.bf16.msra.mxu0 %v2590_v7  ;;  %v398_v48 = vshll.u32 %v304_v34, 16  ;;  %v404_v49 = vshll.u32 %v305_v37, 16  ;;  %v317_v56 = vld [vmem:[%s4822_s25 + $0x34] sm:$0xf]  ;;  %s6187_s8 = scalar_lea.hbm %s6255_s4, %s3811_s19 }
  0x2c   : > { %4155 = vmatprep.mubr.msk.bf16.mxu0 %vm1202_vm1, %v4863_v42  ;;  %v408_v50 = vshrl.u32 %v305_v37, 16  ;;  %v414_v51 = vshll.u32 %v4857_v38, 16  ;;  %v418_v54 = vshrl.u32 %v4857_v38, 16  ;;  %v502_v57 = vshll.u32 %v316_v52, 16  ;;  %v308_v7 = vld [vmem:[%s4822_s25 + $0x10] sm:$0x1] }
  0x2d   : > { %v397_v53 = vrot.slane %v395_v47, 4  ;;  %v400_v58 = vrot.slane %v398_v48, 5  ;;  %v406_v59 = vrot.slane %v404_v49, 5  ;;  %v4886_v62 = vrot.slane %v492_v40, 5  ;;  %v319_v18 = vld [vmem:[%s4822_s25 + $0x3c] sm:$0xf] }
  0x2e   : > { %v410_v60 = vrot.slane %v408_v50, 4  ;;  %v416_v61 = vrot.slane %v414_v51, 5  ;;  %v4888_v63 = vrot.slane %v496_v41, 4  ;;  %v420_v0 = vrot.slane %v418_v54, 4  ;;  %v320_v30 = vld [vmem:[%s4822_s25 + $0x40] sm:$0xf] }
  0x2f   : > { %v506_v1 = vshrl.u32 %v316_v52, 16  ;;  %v401_v2 = vor.u32 %v400_v58, %v397_v53  ;;  %v4890_v4 = vrot.slane %v502_v57, 5  ;;  %v4892_v5 = vcombine.low %v316_v52, %v317_v56  ;;  %v321_v49 = vld [vmem:[%s4822_s25 + $0x44] sm:$0xf]  ;;  %v322_v53 = vld [vmem:[%s4822_s25 + $0x48] sm:$0xf] }
  0x30   : > { %v411_v3 = vor.u32 %v410_v60, %v406_v59  ;;  %v421_v9 = vor.u32 %v420_v0, %v416_v61  ;;  %v512_v10 = vshll.u32 %v317_v56, 16  ;;  %v516_v11 = vshrl.u32 %v317_v56, 16  ;;  %s4689_s23 = smov [#allocation2]  }
  0x31   : > { %v424_v12 = vshll.u32 %v4876_v46, 16  ;;  %v402_v13 = vrot.slane %v401_v2, 4  ;;  %v4902_v15 = vrot.slane %v506_v1, 4  ;;  %v428_v17 = vshrl.u32 %v4876_v46, 16 }
  0x32   : > { %v412_v14 = vrot.slane %v411_v3, 4  ;;  %4156 = vmatmul.mubr.msk.bf16.gmra.mrb[4].mxu0 %vm1202_vm1, %v4892_v5  ;;  %v422_v19 = vrot.slane %v421_v9, 4  ;;  %v434_v21 = vshll.u32 %v308_v7, 16  ;;  %v527_v23 = vshrl.u32 %v319_v18, 16  ;;  %v324_v7 = vld [vmem:[%s4822_s25 + $0x50] sm:$0xf] }
  0x33   : > { %v426_v20 = vrot.slane %v424_v12, 5  ;;  %v407_v24 = vsel %vm4897_vm4, %v402_v13, %v406_v59  ;;  %v430_v29 = vrot.slane %v428_v17, 4  ;;  %v530_v31 = vshll.u32 %v319_v18, 16  ;;  %v325_v9 = vld [vmem:[%s4822_s25 + $0x54] sm:$0xf] }
  0x34   : > { %v417_v28 = vsel %vm4897_vm4, %v412_v14, %v416_v61  ;;  %v4913_v34 = vrot.slane %v512_v10, 5  ;;  %v4915_v36 = vrot.slane %v516_v11, 4  ;;  %v436_v41 = vrot.slane %v434_v21, 5  ;;  %v313_v61 = vld [vmem:[%s4822_s25 + $0x24] sm:$0x1] }
  0x35   : > { %v3538_v33 = vcombine.low %v407_v24, %v417_v28  ;;  %v427_v37 = vsel %vm4897_vm4, %v422_v19, %v426_v20  ;;  %v431_v40 = vor.u32 %v430_v29, %v426_v20  ;;  %v536_v47 = vshll.u32 %v320_v30, 16  ;;  %v326_v29 = vld [vmem:[%s4822_s25 + $0x58] sm:$0xf] }
  0x36   : > { %v540_v48 = vshrl.u32 %v320_v30, 16  ;;  %v4921_v50 = vcombine.low %v319_v18, %v320_v30  ;;  %v451_v51 = vsel %vm4897_vm4, %v4859_v39, %v4836_v22  ;;  %v461_v52 = vsel %vm4897_vm4, %v4869_v43, %v4841_v25 }
  0x37   : > { %4019 = vmatprep.mubr.msk.bf16.mxu1 %vm1202_vm1, %v3538_v33  ;;  %v546_v54 = vshll.u32 %v321_v49, 16  ;;  %v432_v56 = vrot.slane %v431_v40, 4  ;;  %v4932_v57 = vrot.slane %v527_v23, 4  ;;  %v4934_v58 = vrot.slane %v530_v31, 5 }
  0x38   : > { %v4936_v59 = vrot.slane %v536_v47, 5  ;;  %v4938_v60 = vrot.slane %v540_v48, 4  ;;  %4159 = vmatprep.mubr.msk.bf16.mxu0 %vm1202_vm1, %v4921_v50  ;;  %v4942_v22 = vcombine.low %v451_v51, %v461_v52  ;;  %v550_v39 = vshrl.u32 %v321_v49, 16  ;;  %v318_v51 = vld [vmem:[%s4822_s25 + $0x38] sm:$0x1] }
  0x39   : > { %v556_v43 = vshll.u32 %v322_v53, 16  ;;  %v437_v0 = vsel %vm4897_vm4, %v432_v56, %v436_v41  ;;  %v4947_v1 = vcombine.low %v321_v49, %v322_v53  ;;  %v465_v2 = vor.u32 %v4843_v26, %v4841_v25 }
  0x3a   : > { %v475_v3 = vor.u32 %v4853_v35, %v4845_v27  ;;  %v3539_v10 = vcombine.low %v427_v37, %v437_v0  ;;  %v4955_v11 = vrot.slane %v546_v54, 5  ;;  %v4957_v12 = vrot.slane %v550_v39, 4  ;;  %v327_v37 = vld [vmem:[%s4822_s25 + $0x5c] sm:$0xf]  ;;  %v329_v0 = vld [vmem:[%s4822_s25 + $0x64] sm:$0xf] }
  0x3b   : > { %v560_v13 = vshrl.u32 %v322_v53, 16  ;;  %4160 = vmatmul.mubr.msk.bf16.gmra.mrb[8].mxu0 %vm1202_vm1, %v4947_v1  ;;  %v466_v14 = vrot.slane %v465_v2, 4  ;;  %v478_v18 = vshll.u32 %v313_v61, 16  ;;  %v571_v19 = vshrl.u32 %v324_v7, 16  ;;  %v330_v2 = vld [vmem:[%s4822_s25 + $0x68] sm:$0xf] }
  0x3c   : > { %v476_v17 = vrot.slane %v475_v3, 4  ;;  %4020 = vmatmul.mubr.msk.bf16.vlgmr.msra.gmra.mrb[0].mxu1 %vm1202_vm1, %v3539_v10  ;;  %v574_v25 = vshll.u32 %v324_v7, 16  ;;  %v580_v26 = vshll.u32 %v325_v9, 16  ;;  %v584_v35 = vshrl.u32 %v325_v9, 16 }
  0x3d   : > { %v4962_v20 = vcombine.low %v324_v7, %v325_v9  ;;  %4084 = vmatpush3.bf16.msra.mxu1 %v4825_v6  ;;  %4023 = vmatprep.mubr.msk.bf16.mxu1 %vm1202_vm1, %v4942_v22  ;;  %v4967_v21 = vrot.slane %v556_v43, 5  ;;  %v471_v23 = vsel %vm4897_vm4, %v466_v14, %v4845_v27  ;;  %v480_v24 = vrot.slane %v478_v18, 5 }
  0x3e   : > { %v489_v28 = vor.u32 %v4873_v45, %v4871_v44  ;;  %v4975_v30 = vrot.slane %v560_v13, 4  ;;  %v4977_v31 = vrot.slane %v571_v19, 4  ;;  %v4979_v6 = vrot.slane %v574_v25, 5 }
  0x3f   : > { %4163 = vmatprep.mubr.msk.bf16.mxu0 %vm1202_vm1, %v4962_v20  ;;  %v499_v33 = vor.u32 %v4888_v63, %v4886_v62  ;;  %v481_v27 = vsel %vm4897_vm4, %v476_v17, %v480_v24  ;;  %v590_v44 = vshll.u32 %v326_v29, 16  ;;  %v594_v45 = vshrl.u32 %v326_v29, 16  ;;  %v332_v24 = vld [vmem:[%s4822_s25 + $0x70] sm:$0xf] }
  0x40   : > { %v490_v40 = vrot.slane %v489_v28, 4  ;;  %v4988_v41 = vcombine.low %v471_v23, %v481_v27  ;;  %v4990_v47 = vrot.slane %v580_v26, 5  ;;  %v4992_v48 = vrot.slane %v584_v35, 4 }
  0x41   : > { %v500_v49 = vrot.slane %v499_v33, 4  ;;  %v600_v52 = vshll.u32 %v327_v37, 16  ;;  %v604_v53 = vshrl.u32 %v327_v37, 16  ;;  %v4998_v54 = vcombine.low %v326_v29, %v327_v37 }
  0x42   : > { %v495_v63 = vsel %vm4897_vm4, %v490_v40, %v4886_v62  ;;  %v5003_v39 = vrot.slane %v590_v44, 5  ;;  %v5005_v43 = vrot.slane %v594_v45, 4  ;;  %v509_v61 = vor.u32 %v4902_v15, %v4890_v4  ;;  %v323_v45 = vld [vmem:[%s4822_s25 + $0x4c] sm:$0x1] }
  0x43   : > { %v505_v56 = vsel %vm4897_vm4, %v500_v49, %v4890_v4  ;;  %4164 = vmatmul.mubr.msk.bf16.gmra.mrb[12].mxu0 %vm1202_vm1, %v4998_v54  ;;  %v519_v62 = vor.u32 %v4915_v36, %v4913_v34  ;;  %v522_v7 = vshll.u32 %v318_v51, 16  ;;  %v615_v9 = vshrl.u32 %v329_v0, 16  ;;  %v331_v36 = vld [vmem:[%s4822_s25 + $0x6c] sm:$0xf] }
  0x44   : > { %v5011_v3 = vcombine.low %v495_v63, %v505_v56  ;;  %4024 = vmatmul.mubr.msk.bf16.gmra.mrb[4].mxu1 %vm1202_vm1, %v4988_v41  ;;  %v510_v10 = vrot.slane %v509_v61, 4  ;;  %v618_v13 = vshll.u32 %v329_v0, 16  ;;  %v624_v4 = vshll.u32 %v330_v2, 16 }
  0x45   : > { %v628_v15 = vshrl.u32 %v330_v2, 16  ;;  %v5021_v14 = vrot.slane %v600_v52, 5  ;;  %v520_v17 = vrot.slane %v519_v62, 4  ;;  %v524_v18 = vrot.slane %v522_v7, 5  ;;  %v334_v62 = vld [vmem:[%s4822_s25 + $0x78] sm:$0xf] }
  0x46   : > { %4027 = vmatprep.mubr.msk.bf16.mxu1 %vm1202_vm1, %v5011_v3  ;;  %v5023_v19 = vcombine.low %v329_v0, %v330_v2  ;;  %v5026_v25 = vrot.slane %v604_v53, 4  ;;  %v515_v26 = vsel %vm4897_vm4, %v510_v10, %v4913_v34  ;;  %v5031_v35 = vrot.slane %v615_v9, 4  ;;  %v335_v7 = vld [vmem:[%s4822_s25 + $0x7c] sm:$0xf] }
  0x47   : > { %v5033_v23 = vrot.slane %v618_v13, 5  ;;  %v525_v28 = vsel %vm4897_vm4, %v520_v17, %v524_v18  ;;  %v533_v29 = vor.u32 %v4934_v58, %v4932_v57  ;;  %v543_v33 = vor.u32 %v4938_v60, %v4936_v59 }
  0x48   : > { %6296 = vst [vmem:[#allocation7_spill] sm:$0xff] %v5023_v19  ;;  %4167 = vmatprep.mubr.msk.bf16.mxu0 %vm1202_vm1, %v5023_v19  ;;  %v634_v37 = vshll.u32 %v331_v36, 16  ;;  %v5044_v27 = vcombine.low %v515_v26, %v525_v28  ;;  %v5046_v34 = vrot.slane %v624_v4, 5  ;;  %v5048_v40 = vrot.slane %v628_v15, 4  ;;  %v336_v26 = vld [vmem:[%s4822_s25 + $0x80] sm:$0xf] }
  0x49   : > { %v638_v44 = vshrl.u32 %v331_v36, 16  ;;  %v534_v49 = vrot.slane %v533_v29, 4  ;;  %v544_v51 = vrot.slane %v543_v33, 4  ;;  %v644_v63 = vshll.u32 %v332_v24, 16 }
  0x4a   : > { %v5051_v52 = vcombine.low %v331_v36, %v332_v24  ;;  %v5053_v57 = vrot.slane %v634_v37, 5  ;;  %v648_v60 = vshrl.u32 %v332_v24, 16  ;;  %v553_v53 = vor.u32 %v4957_v12, %v4955_v11  ;;  %v337_v24 = vld [vmem:[%s4822_s25 + $0x84] sm:$0xf] }
  0x4b   : > { %v5055_v58 = vrot.slane %v638_v44, 4  ;;  %v539_v56 = vsel %vm4897_vm4, %v534_v49, %v4936_v59  ;;  %v549_v61 = vsel %vm4897_vm4, %v544_v51, %v4955_v11  ;;  %v563_v0 = vor.u32 %v4975_v30, %v4967_v21 }
  0x4c   : > { %6297 = vst [vmem:[#allocation8_spill] sm:$0xff] %v5051_v52  ;;  %4168 = vmatmul.mubr.msk.bf16.gmra.mrb[16].mxu0 %vm1202_vm1, %v5051_v52  ;;  %v566_v2 = vshll.u32 %v323_v45, 16  ;;  %4028 = vmatmul.mubr.msk.bf16.gmra.mrb[8].mxu1 %vm1202_vm1, %v5044_v27  ;;  %v5073_v12 = vcombine.low %v539_v56, %v549_v61  ;;  %v554_v59 = vrot.slane %v553_v53, 4  ;;  %v659_v9 = vshrl.u32 %v334_v62, 16 }
  0x4d   : > { %v662_v10 = vshll.u32 %v334_v62, 16  ;;  %v564_v11 = vrot.slane %v563_v0, 4  ;;  %v668_v4 = vshll.u32 %v335_v7, 16  ;;  %v672_v15 = vshrl.u32 %v335_v7, 16 }
  0x4e   : > { %v568_v13 = vrot.slane %v566_v2, 5  ;;  %4031 = vmatprep.mubr.msk.bf16.mxu1 %vm1202_vm1, %v5073_v12  ;;  %v5077_v30 = vrot.slane %v644_v63, 5  ;;  %v5079_v17 = vrot.slane %v648_v60, 4  ;;  %v559_v18 = vsel %vm4897_vm4, %v554_v59, %v4967_v21  ;;  %v339_v59 = vld [vmem:[%s4822_s25 + $0x8c] sm:$0xf] }
  0x4f   : > { %v5084_v36 = vcombine.low %v334_v62, %v335_v7  ;;  %v5090_v29 = vrot.slane %v659_v9, 4  ;;  %v5092_v33 = vrot.slane %v662_v10, 5  ;;  %v577_v37 = vor.u32 %v4979_v6, %v4977_v31  ;;  %v328_v31 = vld [vmem:[%s4822_s25 + $0x60] sm:$0x1]  ;;  %v340_v10 = vld [vmem:[%s4822_s25 + $0x90] sm:$0xf] }
  0x50   : > { %v569_v28 = vsel %vm4897_vm4, %v564_v11, %v568_v13  ;;  %v587_v21 = vor.u32 %v4992_v48, %v4990_v47  ;;  %v678_v45 = vshll.u32 %v336_v26, 16  ;;  %v682_v49 = vshrl.u32 %v336_v26, 16 }
  0x51   : > { %6298 = vst [vmem:[#allocation9_spill] sm:$0xff] %v5084_v36  ;;  %v5096_v44 = vcombine.low %v559_v18, %v569_v28  ;;  %4171 = vmatprep.mubr.msk.bf16.mxu0 %vm1202_vm1, %v5084_v36  ;;  %v5102_v51 = vrot.slane %v668_v4, 5  ;;  %v5104_v63 = vrot.slane %v672_v15, 4  ;;  %v578_v60 = vrot.slane %v577_v37, 4 }
  0x52   : > { %v5106_v53 = vcombine.low %v336_v26, %v337_v24  ;;  %v588_v6 = vrot.slane %v587_v21, 4  ;;  %v688_v56 = vshll.u32 %v337_v24, 16  ;;  %v692_v61 = vshrl.u32 %v337_v24, 16 }
  0x53   : > { %v597_v0 = vor.u32 %v5005_v43, %v5003_v39  ;;  %v583_v48 = vsel %vm4897_vm4, %v578_v60, %v4990_v47  ;;  %v5114_v2 = vrot.slane %v678_v45, 5  ;;  %v5116_v62 = vrot.slane %v682_v49, 4  ;;  %v341_v49 = vld [vmem:[%s4822_s25 + $0x94] sm:$0xf]  ;;  %v342_v60 = vld [vmem:[%s4822_s25 + $0x98] sm:$0xf] }
  0x54   : > { %6299 = vst [vmem:[#allocation10_spill] sm:$0xff] %v5106_v53  ;;  %4172 = vmatmul.mubr.msk.bf16.gmra.mrb[20].mxu0 %vm1202_vm1, %v5106_v53  ;;  %v607_v7 = vor.u32 %v5026_v25, %v5021_v14  ;;  %4032 = vmatmul.mubr.msk.bf16.gmra.mrb[12].mxu1 %vm1202_vm1, %v5096_v44  ;;  %v593_v43 = vsel %vm4897_vm4, %v588_v6, %v5003_v39  ;;  %v610_v47 = vshll.u32 %v328_v31, 16  ;;  %v703_v11 = vshrl.u32 %v339_v59, 16 }
  0x55   : > { %v598_v9 = vrot.slane %v597_v0, 4  ;;  %v5129_v13 = vcombine.low %v583_v48, %v593_v43  ;;  %v706_v15 = vshll.u32 %v339_v59, 16  ;;  %v712_v18 = vshll.u32 %v340_v10, 16 }
  0x56   : > { %v608_v4 = vrot.slane %v607_v7, 4  ;;  %v5131_v25 = vrot.slane %v688_v56, 5  ;;  %v612_v24 = vrot.slane %v610_v47, 5  ;;  %v716_v28 = vshrl.u32 %v340_v10, 16 }
  0x57   : > { %v603_v26 = vsel %vm4897_vm4, %v598_v9, %v5021_v14  ;;  %4035 = vmatprep.mubr.msk.bf16.mxu1 %vm1202_vm1, %v5129_v13  ;;  %v5138_v39 = vrot.slane %v692_v61, 4  ;;  %v5140_v37 = vrot.slane %v703_v11, 4  ;;  %v5142_v21 = vcombine.low %v339_v59, %v340_v10 }
  0x58   : > { %v621_v45 = vor.u32 %v5033_v23, %v5031_v35  ;;  %v613_v14 = vsel %vm4897_vm4, %v608_v4, %v612_v24  ;;  %v5150_v31 = vrot.slane %v706_v15, 5  ;;  %v631_v6 = vor.u32 %v5048_v40, %v5046_v34  ;;  %v333_v23 = vld [vmem:[%s4822_s25 + $0x74] sm:$0x1] }
  0x59   : > { %6300 = vst [vmem:[#allocation11_spill] sm:$0xff] %v5142_v21  ;;  %v722_v56 = vshll.u32 %v341_v49, 16  ;;  %v5154_v61 = vcombine.low %v603_v26, %v613_v14  ;;  %v5156_v0 = vrot.slane %v712_v18, 5  ;;  %4175 = vmatprep.mubr.msk.bf16.mxu0 %vm1202_vm1, %v5142_v21  ;;  %v726_v35 = vshrl.u32 %v341_v49, 16  ;;  %v344_v26 = vld [vmem:[%s4822_s25 + $0xa0] sm:$0xf] }
  0x5a   : > { %v622_v48 = vrot.slane %v621_v45, 4  ;;  %v5161_v7 = vrot.slane %v716_v28, 4  ;;  %v632_v59 = vrot.slane %v631_v6, 4  ;;  %v732_v43 = vshll.u32 %v342_v60, 16 }
  0x5b   : > { %v5163_v9 = vcombine.low %v341_v49, %v342_v60  ;;  %v5168_v47 = vrot.slane %v722_v56, 5  ;;  %v736_v10 = vshrl.u32 %v342_v60, 16  ;;  %v641_v11 = vor.u32 %v5055_v58, %v5053_v57  ;;  %v345_v58 = vld [vmem:[%s4822_s25 + $0xa4] sm:$0xf] }
  0x5c   : > { %v627_v40 = vsel %vm4897_vm4, %v622_v48, %v5046_v34  ;;  %4036 = vmatmul.mubr.msk.bf16.gmra.mrb[16].mxu1 %vm1202_vm1, %v5154_v61  ;;  %v637_v4 = vsel %vm4897_vm4, %v632_v59, %v5053_v57  ;;  %v5177_v15 = vrot.slane %v726_v35, 4  ;;  %v651_v34 = vor.u32 %v5079_v17, %v5077_v30  ;;  %v347_v59 = vld [vmem:[%s4822_s25 + $0xac] sm:$0xf] }
  0x5d   : > { %6301 = vst [vmem:[#allocation12_spill] sm:$0xff] %v5163_v9  ;;  %4176 = vmatmul.mubr.msk.bf16.gmra.mrb[24].mxu0 %vm1202_vm1, %v5163_v9  ;;  %v654_v18 = vshll.u32 %v333_v23, 16  ;;  %v5185_v24 = vcombine.low %v627_v40, %v637_v4  ;;  %v642_v28 = vrot.slane %v641_v11, 4  ;;  %v747_v45 = vshrl.u32 %v344_v26, 16  ;;  %v346_v23 = vld [vmem:[%s4822_s25 + $0xa8] sm:$0xf] }
  0x5e   : > { %v750_v49 = vshll.u32 %v344_v26, 16  ;;  %v652_v60 = vrot.slane %v651_v34, 4  ;;  %v756_v14 = vshll.u32 %v345_v58, 16  ;;  %v760_v6 = vshrl.u32 %v345_v58, 16 }
  0x5f   : > { %v656_v57 = vrot.slane %v654_v18, 5  ;;  %4039 = vmatprep.mubr.msk.bf16.mxu1 %vm1202_vm1, %v5185_v24  ;;  %v5189_v56 = vrot.slane %v732_v43, 5  ;;  %v5191_v17 = vrot.slane %v736_v10, 4  ;;  %v647_v48 = vsel %vm4897_vm4, %v642_v28, %v5077_v30 }
  0x60   : > { %v5196_v35 = vcombine.low %v344_v26, %v345_v58  ;;  %v5202_v11 = vrot.slane %v747_v45, 4  ;;  %v5204_v4 = vrot.slane %v750_v49, 5  ;;  %v665_v43 = vor.u32 %v5092_v33, %v5090_v29  ;;  %v338_v29 = vld [vmem:[%s4822_s25 + $0x88] sm:$0x1] }
  0x61   : > { %v657_v40 = vsel %vm4897_vm4, %v652_v60, %v656_v57  ;;  %v675_v30 = vor.u32 %v5104_v63, %v5102_v51  ;;  %v766_v34 = vshll.u32 %v346_v23, 16  ;;  %v770_v18 = vshrl.u32 %v346_v23, 16 }
  0x62   : > { %6302 = vst [vmem:[#allocation13_spill] sm:$0xff] %v5196_v35  ;;  %v5208_v10 = vcombine.low %v647_v48, %v657_v40  ;;  %4179 = vmatprep.mubr.msk.bf16.mxu0 %vm1202_vm1, %v5196_v35  ;;  %v5214_v26 = vrot.slane %v756_v14, 5  ;;  %v5216_v58 = vrot.slane %v760_v6, 4  ;;  %v666_v28 = vrot.slane %v665_v43, 4  ;;  %v350_v43 = vld [vmem:[%s4822_s25 + $0xb8] sm:$0xf] }
  0x63   : > { %v5218_v45 = vcombine.low %v346_v23, %v347_v59  ;;  %v676_v33 = vrot.slane %v675_v30, 4  ;;  %v776_v49 = vshll.u32 %v347_v59, 16  ;;  %v780_v60 = vshrl.u32 %v347_v59, 16  ;;  %v349_v23 = vld [vmem:[%s4822_s25 + $0xb4] sm:$0xf] }
  0x64   : > { %v685_v57 = vor.u32 %v5116_v62, %v5114_v2  ;;  %4040 = vmatmul.mubr.msk.bf16.gmra.mrb[20].mxu1 %vm1202_vm1, %v5208_v10  ;;  %v671_v63 = vsel %vm4897_vm4, %v666_v28, %v5102_v51  ;;  %v5228_v14 = vrot.slane %v766_v34, 5  ;;  %v5230_v6 = vrot.slane %v770_v18, 4 }
  0x65   : > { %6303 = vst [vmem:[#allocation14_spill] sm:$0xff] %v5218_v45  ;;  %4180 = vmatmul.mubr.msk.bf16.gmra.mrb[28].mxu0 %vm1202_vm1, %v5218_v45  ;;  %v695_v48 = vor.u32 %v5138_v39, %v5131_v25  ;;  %v681_v62 = vsel %vm4897_vm4, %v676_v33, %v5114_v2  ;;  %v698_v40 = vshll.u32 %v338_v29, 16  ;;  %v791_v51 = vshrl.u32 %v349_v23, 16 }
  0x66   : > { %v686_v59 = vrot.slane %v685_v57, 4  ;;  %v5241_v30 = vcombine.low %v671_v63, %v681_v62  ;;  %v794_v18 = vshll.u32 %v349_v23, 16  ;;  %v800_v28 = vshll.u32 %v350_v43, 16  ;;  %v351_v57 = vld [vmem:[%s4822_s25 + $0xbc] sm:$0xf] }
  0x67   : > { %v696_v34 = vrot.slane %v695_v48, 4  ;;  %v5243_v55 = vrot.slane %v776_v49, 5  ;;  %v700_v45 = vrot.slane %v698_v40, 5  ;;  %v804_v35 = vshrl.u32 %v350_v43, 16  ;;  %v352_v63 = vld [vmem:[%s4822_s25 + $0xc0] sm:$0xf] }
  0x68   : > { %v691_v39 = vsel %vm4897_vm4, %v686_v59, %v5131_v25  ;;  %4043 = vmatprep.mubr.msk.bf16.mxu1 %vm1202_vm1, %v5241_v30  ;;  %v5250_v2 = vrot.slane %v780_v60, 4  ;;  %v5252_v29 = vrot.slane %v791_v51, 4  ;;  %v5254_v33 = vcombine.low %v349_v23, %v350_v43 }
  0x69   : > { %v709_v49 = vor.u32 %v5150_v31, %v5140_v37  ;;  %v701_v25 = vsel %vm4897_vm4, %v696_v34, %v700_v45  ;;  %v5262_v48 = vrot.slane %v794_v18, 5  ;;  %v719_v62 = vor.u32 %v5161_v7, %v5156_v0  ;;  %v343_v31 = vld [vmem:[%s4822_s25 + $0x9c] sm:$0x1] }
  0x6a   : > { %6304 = vst [vmem:[#allocation15_spill] sm:$0xff] %v5254_v33  ;;  %v810_v59 = vshll.u32 %v351_v57, 16  ;;  %v5266_v60 = vcombine.low %v691_v39, %v701_v25  ;;  %v5268_v40 = vrot.slane %v800_v28, 5  ;;  %4183 = vmatprep.mubr.msk.bf16.mxu0 %vm1202_vm1, %v5254_v33  ;;  %v814_v37 = vshrl.u32 %v351_v57, 16 }
  0x6b   : > { %v710_v23 = vrot.slane %v709_v49, 4  ;;  %v5273_v43 = vrot.slane %v804_v35, 4  ;;  %v720_v45 = vrot.slane %v719_v62, 4  ;;  %v820_v51 = vshll.u32 %v352_v63, 16 }
  0x6c   : > { %v5275_v34 = vcombine.low %v351_v57, %v352_v63  ;;  %4044 = vmatmul.mubr.msk.bf16.gmra.mrb[24].mxu1 %vm1202_vm1, %v5266_v60  ;;  %v5282_v18 = vrot.slane %v810_v59, 5  ;;  %v824_v28 = vshrl.u32 %v352_v63, 16  ;;  %v729_v39 = vor.u32 %v5177_v15, %v5168_v47  ;;  %v355_v63 = vld [vmem:[%s4822_s25 + $0xcc] sm:$0xf] }
  0x6d   : > { %v715_v7 = vsel %vm4897_vm4, %v710_v23, %v5156_v0  ;;  %v725_v35 = vsel %vm4897_vm4, %v720_v45, %v5168_v47  ;;  %v5289_v49 = vrot.slane %v814_v37, 4  ;;  %v739_v57 = vor.u32 %v5191_v17, %v5189_v56  ;;  %v354_v0 = vld [vmem:[%s4822_s25 + $0xc8] sm:$0xf] }
  0x6e   : > { %6305 = vst [vmem:[#allocation16_spill] sm:$0xff] %v5275_v34  ;;  %4184 = vmatmul.mubr.msk.bf16.gmra.mrb[32].mxu0 %vm1202_vm1, %v5275_v34  ;;  %v742_v25 = vshll.u32 %v343_v31, 16  ;;  %v5297_v62 = vcombine.low %v715_v7, %v725_v35  ;;  %v730_v15 = vrot.slane %v729_v39, 4  ;;  %v835_v59 = vshrl.u32 %v354_v0, 16  ;;  %v356_v39 = vld [vmem:[%s4822_s25 + $0xd0] sm:$0xf] }
  0x6f   : > { %v838_v23 = vshll.u32 %v354_v0, 16  ;;  %v740_v33 = vrot.slane %v739_v57, 4  ;;  %v844_v37 = vshll.u32 %v355_v63, 16  ;;  %v848_v45 = vshrl.u32 %v355_v63, 16  ;;  %v357_v35 = vld [vmem:[%s4822_s25 + $0xd4] sm:$0xf] }
  0x70   : > { %v744_v47 = vrot.slane %v742_v25, 5  ;;  %4047 = vmatprep.mubr.msk.bf16.mxu1 %vm1202_vm1, %v5297_v62  ;;  %v5301_v34 = vrot.slane %v820_v51, 5  ;;  %v5303_v17 = vrot.slane %v824_v28, 4  ;;  %v735_v31 = vsel %vm4897_vm4, %v730_v15, %v5189_v56 }
  0x71   : > { %v5308_v7 = vcombine.low %v354_v0, %v355_v63  ;;  %v5314_v25 = vrot.slane %v835_v59, 4  ;;  %v5316_v9 = vrot.slane %v838_v23, 5  ;;  %v753_v51 = vor.u32 %v5204_v4, %v5202_v11  ;;  %v348_v11 = vld [vmem:[%s4822_s25 + $0xb0] sm:$0x1] }
  0x72   : > { %v745_v57 = vsel %vm4897_vm4, %v740_v33, %v744_v47  ;;  %v763_v56 = vor.u32 %v5216_v58, %v5214_v26  ;;  %v854_v0 = vshll.u32 %v356_v39, 16  ;;  %v858_v63 = vshrl.u32 %v356_v39, 16 }
  0x73   : > { %6306 = vst [vmem:[#allocation17_spill] sm:$0xff] %v5308_v7  ;;  %v5320_v28 = vcombine.low %v735_v31, %v745_v57  ;;  %4187 = vmatprep.mubr.msk.bf16.mxu0 %vm1202_vm1, %v5308_v7  ;;  %v5326_v15 = vrot.slane %v844_v37, 5  ;;  %v5328_v33 = vrot.slane %v848_v45, 4  ;;  %v754_v59 = vrot.slane %v753_v51, 4  ;;  %v359_v51 = vld [vmem:[%s4822_s25 + $0xdc] sm:$0xf] }
  0x74   : > { %v5330_v23 = vcombine.low %v356_v39, %v357_v35  ;;  %v764_v4 = vrot.slane %v763_v56, 4  ;;  %v864_v47 = vshll.u32 %v357_v35, 16  ;;  %v868_v31 = vshrl.u32 %v357_v35, 16  ;;  %v360_v7 = vld [vmem:[%s4822_s25 + $0xe0] sm:$0xf] }
  0x75   : > { %4048 = vmatmul.mubr.msk.bf16.gmra.mrb[28].mxu1 %vm1202_vm1, %v5320_v28  ;;  %v773_v58 = vor.u32 %v5230_v6, %v5228_v14  ;;  %v759_v37 = vsel %vm4897_vm4, %v754_v59, %v5214_v26  ;;  %v5340_v45 = vrot.slane %v854_v0, 5  ;;  %v5342_v57 = vrot.slane %v858_v63, 4 }
  0x76   : > { %6307 = vst [vmem:[#allocation18_spill] sm:$0xff] %v5330_v23  ;;  %4188 = vmatmul.mubr.msk.bf16.gmra.mrb[36].mxu0 %vm1202_vm1, %v5330_v23  ;;  %v783_v39 = vor.u32 %v5250_v2, %v5243_v55  ;;  %v769_v35 = vsel %vm4897_vm4, %v764_v4, %v5228_v14  ;;  %v786_v56 = vshll.u32 %v348_v11, 16  ;;  %v879_v26 = vshrl.u32 %v359_v51, 16 }
  0x77   : > { %v774_v6 = vrot.slane %v773_v58, 4  ;;  %v5353_v0 = vcombine.low %v759_v37, %v769_v35  ;;  %v882_v59 = vshll.u32 %v359_v51, 16  ;;  %v888_v21 = vshll.u32 %v360_v7, 16  ;;  %v361_v58 = vld [vmem:[%s4822_s25 + $0xe4] sm:$0xf] }
  0x78   : > { %v784_v63 = vrot.slane %v783_v39, 4  ;;  %v5355_v23 = vrot.slane %v864_v47, 5  ;;  %v788_v53 = vrot.slane %v786_v56, 5  ;;  %v892_v36 = vshrl.u32 %v360_v7, 16  ;;  %v362_v37 = vld [vmem:[%s4822_s25 + $0xe8] sm:$0xf] }
  0x79   : > { %6308 = vst [vmem:[#allocation19_spill] sm:$0xff] %v5353_v0  ;;  %v779_v2 = vsel %vm4897_vm4, %v774_v6, %v5243_v55  ;;  %4051 = vmatprep.mubr.msk.bf16.mxu1 %vm1202_vm1, %v5353_v0  ;;  %v5362_v14 = vrot.slane %v868_v31, 4  ;;  %v5364_v11 = vrot.slane %v879_v26, 4  ;;  %v5366_v4 = vcombine.low %v359_v51, %v360_v7 }
  0x7a   : > { %v797_v47 = vor.u32 %v5262_v48, %v5252_v29  ;;  %v789_v55 = vsel %vm4897_vm4, %v784_v63, %v788_v53  ;;  %v5374_v39 = vrot.slane %v882_v59, 5  ;;  %v807_v35 = vor.u32 %v5273_v43, %v5268_v40  ;;  %v353_v48 = vld [vmem:[%s4822_s25 + $0xc4] sm:$0x1] }
  0x7b   : > { %6309 = vst [vmem:[#allocation20_spill] sm:$0xff] %v5366_v4  ;;  %v898_v6 = vshll.u32 %v361_v58, 16  ;;  %v5378_v31 = vcombine.low %v779_v2, %v789_v55  ;;  %v5380_v56 = vrot.slane %v888_v21, 5  ;;  %4191 = vmatprep.mubr.msk.bf16.mxu0 %vm1202_vm1, %v5366_v4  ;;  %v902_v29 = vshrl.u32 %v361_v58, 16 }
  0x7c   : > { %v798_v7 = vrot.slane %v797_v47, 4  ;;  %v5385_v51 = vrot.slane %v892_v36, 4  ;;  %v808_v53 = vrot.slane %v807_v35, 4  ;;  %v908_v26 = vshll.u32 %v362_v37, 16 }
  0x7d   : > { %6310 = vst [vmem:[#allocation21_spill] sm:$0xff] %v5378_v31  ;;  %v5387_v63 = vcombine.low %v361_v58, %v362_v37  ;;  %4052 = vmatmul.mubr.msk.bf16.gmra.mrb[32].mxu1 %vm1202_vm1, %v5378_v31  ;;  %v5394_v43 = vrot.slane %v898_v6, 5  ;;  %v912_v59 = vshrl.u32 %v362_v37, 16  ;;  %v817_v2 = vor.u32 %v5289_v49, %v5282_v18  ;;  %v365_v37 = vld [vmem:[%s4822_s25 + $0xf4] sm:$0xf] }
  0x7e   : > { %v803_v21 = vsel %vm4897_vm4, %v798_v7, %v5268_v40  ;;  %v813_v36 = vsel %vm4897_vm4, %v808_v53, %v5282_v18  ;;  %v5401_v47 = vrot.slane %v902_v29, 4  ;;  %v827_v58 = vor.u32 %v5303_v17, %v5301_v34  ;;  %v364_v40 = vld [vmem:[%s4822_s25 + $0xf0] sm:$0xf] }
  0x7f   : > { %6311 = vst [vmem:[#allocation22_spill] sm:$0xff] %v5387_v63  ;;  %4192 = vmatmul.mubr.msk.bf16.gmra.mrb[40].mxu0 %vm1202_vm1, %v5387_v63  ;;  %v830_v55 = vshll.u32 %v353_v48, 16  ;;  %v5409_v35 = vcombine.low %v803_v21, %v813_v36  ;;  %v818_v49 = vrot.slane %v817_v2, 4  ;;  %v923_v6 = vshrl.u32 %v364_v40, 16  ;;  %v366_v2 = vld [vmem:[%s4822_s25 + $0xf8] sm:$0xf] }
  0x80   : > { %v926_v7 = vshll.u32 %v364_v40, 16  ;;  %v828_v4 = vrot.slane %v827_v58, 4  ;;  %v932_v29 = vshll.u32 %v365_v37, 16  ;;  %v936_v53 = vshrl.u32 %v365_v37, 16  ;;  %v367_v36 = vld [vmem:[%s4822_s25 + $0xfc] sm:$0xf] }
  0x81   : > { %6312 = vst [vmem:[#allocation23_spill] sm:$0xff] %v5409_v35  ;;  %v832_v18 = vrot.slane %v830_v55, 5  ;;  %4055 = vmatprep.mubr.msk.bf16.mxu1 %vm1202_vm1, %v5409_v35  ;;  %v5413_v63 = vrot.slane %v908_v26, 5  ;;  %v5415_v17 = vrot.slane %v912_v59, 4  ;;  %v823_v48 = vsel %vm4897_vm4, %v818_v49, %v5301_v34 }
  0x82   : > { %v5420_v21 = vcombine.low %v364_v40, %v365_v37  ;;  %v5426_v55 = vrot.slane %v923_v6, 4  ;;  %v5428_v52 = vrot.slane %v926_v7, 5  ;;  %v841_v26 = vor.u32 %v5316_v9, %v5314_v25  ;;  %v358_v9 = vld [vmem:[%s4822_s25 + $0xd8] sm:$0x1] }
  0x83   : > { %v833_v58 = vsel %vm4897_vm4, %v828_v4, %v832_v18  ;;  %v851_v34 = vor.u32 %v5328_v33, %v5326_v15  ;;  %v942_v40 = vshll.u32 %v366_v2, 16  ;;  %v946_v37 = vshrl.u32 %v366_v2, 16 }
  0x84   : > { %6313 = vst [vmem:[#allocation24_spill] sm:$0xff] %v5420_v21  ;;  %v5432_v59 = vcombine.low %v823_v48, %v833_v58  ;;  %4195 = vmatprep.mubr.msk.bf16.mxu0 %vm1202_vm1, %v5420_v21  ;;  %v5438_v49 = vrot.slane %v932_v29, 5  ;;  %v5440_v4 = vrot.slane %v936_v53, 4  ;;  %v842_v6 = vrot.slane %v841_v26, 4  ;;  %v369_v26 = vld [vmem:[%s4822_s25 + $0x104] sm:$0xf] }
  0x85   : > { %v5442_v7 = vcombine.low %v366_v2, %v367_v36  ;;  %v852_v25 = vrot.slane %v851_v34, 4  ;;  %v952_v18 = vshll.u32 %v367_v36, 16  ;;  %v956_v48 = vshrl.u32 %v367_v36, 16  ;;  %v370_v21 = vld [vmem:[%s4822_s25 + $0x108] sm:$0xf] }
  0x86   : > { %6314 = vst [vmem:[#allocation25_spill] sm:$0xff] %v5432_v59  ;;  %4056 = vmatmul.mubr.msk.bf16.gmra.mrb[36].mxu1 %vm1202_vm1, %v5432_v59  ;;  %v861_v33 = vor.u32 %v5342_v57, %v5340_v45  ;;  %v847_v29 = vsel %vm4897_vm4, %v842_v6, %v5326_v15  ;;  %v5452_v53 = vrot.slane %v942_v40, 5  ;;  %v5454_v58 = vrot.slane %v946_v37, 4 }
  0x87   : > { %6315 = vst [vmem:[#allocation26_spill] sm:$0xff] %v5442_v7  ;;  %4196 = vmatmul.mubr.msk.bf16.gmra.mrb[44].mxu0 %vm1202_vm1, %v5442_v7  ;;  %v871_v2 = vor.u32 %v5362_v14, %v5355_v23  ;;  %v857_v36 = vsel %vm4897_vm4, %v852_v25, %v5340_v45  ;;  %v874_v34 = vshll.u32 %v358_v9, 16  ;;  %v967_v15 = vshrl.u32 %v369_v26, 16 }
  0x88   : > { %v862_v57 = vrot.slane %v861_v33, 4  ;;  %v5465_v40 = vcombine.low %v847_v29, %v857_v36  ;;  %v970_v6 = vshll.u32 %v369_v26, 16  ;;  %v976_v59 = vshll.u32 %v370_v21, 16  ;;  %v371_v33 = vld [vmem:[%s4822_s25 + $0x10c] sm:$0xf] }
  0x89   : > { %v872_v37 = vrot.slane %v871_v2, 4  ;;  %v5467_v7 = vrot.slane %v952_v18, 5  ;;  %v876_v35 = vrot.slane %v874_v34, 5  ;;  %v980_v31 = vshrl.u32 %v370_v21, 16  ;;  %v372_v29 = vld [vmem:[%s4822_s25 + $0x110] sm:$0xf] }
  0x8a   : > { %6316 = vst [vmem:[#allocation27_spill] sm:$0xff] %v5465_v40  ;;  %v867_v14 = vsel %vm4897_vm4, %v862_v57, %v5355_v23  ;;  %4059 = vmatprep.mubr.msk.bf16.mxu1 %vm1202_vm1, %v5465_v40  ;;  %v5474_v45 = vrot.slane %v956_v48, 4  ;;  %v5476_v9 = vrot.slane %v967_v15, 4  ;;  %v5478_v25 = vcombine.low %v369_v26, %v370_v21 }
  0x8b   : > { %v885_v18 = vor.u32 %v5374_v39, %v5364_v11  ;;  %v877_v23 = vsel %vm4897_vm4, %v872_v37, %v876_v35  ;;  %v5486_v2 = vrot.slane %v970_v6, 5  ;;  %v895_v36 = vor.u32 %v5385_v51, %v5380_v56  ;;  %v363_v39 = vld [vmem:[%s4822_s25 + $0xec] sm:$0x1] }
  0x8c   : > { %6317 = vst [vmem:[#allocation28_spill] sm:$0xff] %v5478_v25  ;;  %v986_v57 = vshll.u32 %v371_v33, 16  ;;  %v5490_v48 = vcombine.low %v867_v14, %v877_v23  ;;  %v5492_v34 = vrot.slane %v976_v59, 5  ;;  %4199 = vmatprep.mubr.msk.bf16.mxu0 %vm1202_vm1, %v5478_v25  ;;  %v990_v11 = vshrl.u32 %v371_v33, 16 }
  0x8d   : > { %v886_v21 = vrot.slane %v885_v18, 4  ;;  %v5497_v26 = vrot.slane %v980_v31, 4  ;;  %v896_v35 = vrot.slane %v895_v36, 4  ;;  %v996_v15 = vshll.u32 %v372_v29, 16 }
  0x8e   : > { %6318 = vst [vmem:[#allocation29_spill] sm:$0xff] %v5490_v48  ;;  %v5499_v37 = vcombine.low %v371_v33, %v372_v29  ;;  %4060 = vmatmul.mubr.msk.bf16.gmra.mrb[40].mxu1 %vm1202_vm1, %v5490_v48  ;;  %v5506_v59 = vrot.slane %v986_v57, 5  ;;  %v1000_v6 = vshrl.u32 %v372_v29, 16  ;;  %v905_v14 = vor.u32 %v5401_v47, %v5394_v43  ;;  %v375_v29 = vld [vmem:[%s4822_s25 + $0x11c] sm:$0xf] }
  0x8f   : > { %v891_v51 = vsel %vm4897_vm4, %v886_v21, %v5380_v56  ;;  %v901_v31 = vsel %vm4897_vm4, %v896_v35, %v5394_v43  ;;  %v5513_v18 = vrot.slane %v990_v11, 4  ;;  %v915_v33 = vor.u32 %v5415_v17, %v5413_v63  ;;  %v374_v56 = vld [vmem:[%s4822_s25 + $0x118] sm:$0xf] }
  0x90   : > { %6319 = vst [vmem:[#allocation30_spill] sm:$0xff] %v5499_v37  ;;  %4200 = vmatmul.mubr.msk.bf16.gmra.mrb[48].mxu0 %vm1202_vm1, %v5499_v37  ;;  %v918_v23 = vshll.u32 %v363_v39, 16  ;;  %v5521_v36 = vcombine.low %v891_v51, %v901_v31  ;;  %v906_v47 = vrot.slane %v905_v14, 4  ;;  %v1011_v57 = vshrl.u32 %v374_v56, 16  ;;  %v376_v14 = vld [vmem:[%s4822_s25 + $0x120] sm:$0xf] }
  0x91   : > { %v1014_v21 = vshll.u32 %v374_v56, 16  ;;  %v916_v25 = vrot.slane %v915_v33, 4  ;;  %v1020_v11 = vshll.u32 %v375_v29, 16  ;;  %v1024_v35 = vshrl.u32 %v375_v29, 16  ;;  %v377_v31 = vld [vmem:[%s4822_s25 + $0x124] sm:$0xf] }
  0x92   : > { %6320 = vst [vmem:[#allocation31_spill] sm:$0xff] %v5521_v36  ;;  %v920_v43 = vrot.slane %v918_v23, 5  ;;  %4063 = vmatprep.mubr.msk.bf16.mxu1 %vm1202_vm1, %v5521_v36  ;;  %v5525_v37 = vrot.slane %v996_v15, 5  ;;  %v5527_v17 = vrot.slane %v1000_v6, 4  ;;  %v911_v39 = vsel %vm4897_vm4, %v906_v47, %v5413_v63 }
  0x93   : > { %v5532_v51 = vcombine.low %v374_v56, %v375_v29  ;;  %v5538_v23 = vrot.slane %v1011_v57, 4  ;;  %v5540_v48 = vrot.slane %v1014_v21, 5  ;;  %v929_v15 = vor.u32 %v5428_v52, %v5426_v55  ;;  %v368_v52 = vld [vmem:[%s4822_s25 + $0x100] sm:$0x1] }
  0x94   : > { %v921_v33 = vsel %vm4897_vm4, %v916_v25, %v920_v43  ;;  %v939_v63 = vor.u32 %v5440_v4, %v5438_v49  ;;  %v1030_v56 = vshll.u32 %v376_v14, 16  ;;  %v1034_v29 = vshrl.u32 %v376_v14, 16 }
  0x95   : > { %6321 = vst [vmem:[#allocation32_spill] sm:$0xff] %v5532_v51  ;;  %v5544_v6 = vcombine.low %v911_v39, %v921_v33  ;;  %4203 = vmatprep.mubr.msk.bf16.mxu0 %vm1202_vm1, %v5532_v51  ;;  %v5550_v47 = vrot.slane %v1020_v11, 5  ;;  %v5552_v25 = vrot.slane %v1024_v35, 4  ;;  %v930_v57 = vrot.slane %v929_v15, 4  ;;  %v379_v15 = vld [vmem:[%s4822_s25 + $0x12c] sm:$0xf] }
  0x96   : > { %v5554_v21 = vcombine.low %v376_v14, %v377_v31  ;;  %v940_v55 = vrot.slane %v939_v63, 4  ;;  %v1040_v43 = vshll.u32 %v377_v31, 16  ;;  %v1044_v39 = vshrl.u32 %v377_v31, 16  ;;  %v380_v51 = vld [vmem:[%s4822_s25 + $0x130] sm:$0xf] }
  0x97   : > { %6322 = vst [vmem:[#allocation33_spill] sm:$0xff] %v5544_v6  ;;  %4064 = vmatmul.mubr.msk.bf16.gmra.mrb[44].mxu1 %vm1202_vm1, %v5544_v6  ;;  %v949_v4 = vor.u32 %v5454_v58, %v5452_v53  ;;  %v935_v11 = vsel %vm4897_vm4, %v930_v57, %v5438_v49  ;;  %v5564_v35 = vrot.slane %v1030_v56, 5  ;;  %v5566_v33 = vrot.slane %v1034_v29, 4 }
  0x98   : > { %6323 = vst [vmem:[#allocation34_spill] sm:$0xff] %v5554_v21  ;;  %4204 = vmatmul.mubr.msk.bf16.gmra.mrb[52].mxu0 %vm1202_vm1, %v5554_v21  ;;  %v959_v14 = vor.u32 %v5474_v45, %v5467_v7  ;;  %v945_v58 = vsel %vm4897_vm4, %v940_v55, %v5452_v53  ;;  %v962_v63 = vshll.u32 %v368_v52, 16  ;;  %v1055_v49 = vshrl.u32 %v379_v15, 16 }
  0x99   : > { %v950_v31 = vrot.slane %v949_v4, 4  ;;  %v5578_v56 = vcombine.low %v935_v11, %v945_v58  ;;  %v1058_v57 = vshll.u32 %v379_v15, 16  ;;  %v1064_v21 = vshll.u32 %v380_v51, 16  ;;  %v381_v4 = vld [vmem:[%s4822_s25 + $0x134] sm:$0xf] }
  0x9a   : > { %v960_v29 = vrot.slane %v959_v14, 4  ;;  %v5580_v6 = vrot.slane %v1040_v43, 5  ;;  %v964_v36 = vrot.slane %v962_v63, 5  ;;  %v1068_v53 = vshrl.u32 %v380_v51, 16  ;;  %v382_v11 = vld [vmem:[%s4822_s25 + $0x138] sm:$0xf] }
  0x9b   : > { %6324 = vst [vmem:[#allocation35_spill] sm:$0xff] %v5578_v56  ;;  %v955_v45 = vsel %vm4897_vm4, %v950_v31, %v5467_v7  ;;  %4067 = vmatprep.mubr.msk.bf16.mxu1 %vm1202_vm1, %v5578_v56  ;;  %v5592_v52 = vrot.slane %v1044_v39, 4  ;;  %v5594_v55 = vrot.slane %v1055_v49, 4  ;;  %v5596_v43 = vcombine.low %v379_v15, %v380_v51  ;;  %v373_v63 = vld [vmem:[%s4822_s25 + $0x114] sm:$0x1] }
  0x9c   : > { %v973_v7 = vor.u32 %v5486_v2, %v5476_v9  ;;  %v965_v14 = vsel %vm4897_vm4, %v960_v29, %v964_v36  ;;  %v5604_v58 = vrot.slane %v1058_v57, 5  ;;  %v983_v39 = vor.u32 %v5497_v26, %v5492_v34  ;;  %v384_v15 = vld [vmem:[%s5588_s24] sm:$0xf]  ;;  %v385_v26 = vld [vmem:[%s5588_s24 + $0x4] sm:$0xf] }
  0x9d   : > { %6325 = vst [vmem:[#allocation36_spill] sm:$0xff] %v5596_v43  ;;  %v1074_v31 = vshll.u32 %v381_v4, 16  ;;  %v5609_v49 = vcombine.low %v955_v45, %v965_v14  ;;  %v5611_v51 = vrot.slane %v1064_v21, 5  ;;  %4207 = vmatprep.mubr.msk.bf16.mxu0 %vm1202_vm1, %v5596_v43  ;;  %v1078_v2 = vshrl.u32 %v381_v4, 16 }
  0x9e   : > { %v974_v9 = vrot.slane %v973_v7, 4  ;;  %v5616_v56 = vrot.slane %v1068_v53, 4  ;;  %v984_v36 = vrot.slane %v983_v39, 4  ;;  %v1084_v29 = vshll.u32 %v382_v11, 16 }
  0x9f   : > { %6326 = vst [vmem:[#allocation37_spill] sm:$0xff] %v5609_v49  ;;  %v5618_v57 = vcombine.low %v381_v4, %v382_v11  ;;  %4068 = vmatmul.mubr.msk.bf16.gmra.mrb[48].mxu1 %vm1202_vm1, %v5609_v49  ;;  %v5626_v45 = vrot.slane %v1074_v31, 5  ;;  %v1088_v7 = vshrl.u32 %v382_v11, 16  ;;  %v993_v53 = vor.u32 %v5513_v18, %v5506_v59  ;;  %v386_v49 = vld [vmem:[%s5588_s24 + $0x8] sm:$0xf] }
  0xa0   : > { %v979_v21 = vsel %vm4897_vm4, %v974_v9, %v5492_v34  ;;  %v989_v4 = vsel %vm4897_vm4, %v984_v36, %v5506_v59  ;;  %v1080_v14 = vrot.slane %v1078_v2, 4  ;;  %v1003_v39 = vor.u32 %v5527_v17, %v5525_v37  ;;  %v387_v59 = vld [vmem:[%s5588_s24 + $0xc] sm:$0xf] }
  0xa1   : > { %6327 = vst [vmem:[#allocation38_spill] sm:$0xff] %v5618_v57  ;;  %4208 = vmatmul.mubr.msk.bf16.gmra.mrb[56].mxu0 %vm1202_vm1, %v5618_v57  ;;  %v1006_v43 = vshll.u32 %v373_v63, 16  ;;  %v5637_v34 = vcombine.low %v979_v21, %v989_v4  ;;  %v994_v31 = vrot.slane %v993_v53, 4  ;;  %v3670_v11 = vcombine.low %v384_v15, %v385_v26 }
  0xa2   : > { %v2526_v9 = vshrl.u32 %v384_v15, 16  ;;  %v5640_v40 = vrot.slane %v1084_v29, 5  ;;  %v1004_v18 = vrot.slane %v1003_v39, 4  ;;  %v2529_v0 = vshll.u32 %v384_v15, 16 }
  0xa3   : > { %v1008_v19 = vrot.slane %v1006_v43, 5  ;;  %4071 = vmatprep.mubr.msk.bf16.mxu1 %vm1202_vm1, %v5637_v34  ;;  %v1090_v2 = vrot.slane %v1088_v7, 4  ;;  %v999_v17 = vsel %vm4897_vm4, %v994_v31, %v5525_v37  ;;  %4211 = vmatprep.mubr.msk.bf16.mxu0 %vm1202_vm1, %v3670_v11  ;;  %v2535_v63 = vshll.u32 %v385_v26, 16 }
  0xa4   : > { %v1017_v36 = vor.u32 %v5540_v48, %v5538_v23  ;;  %v2528_v15 = vrot.slane %v2526_v9, 4  ;;  %v2539_v29 = vshrl.u32 %v385_v26, 16  ;;  %v1027_v21 = vor.u32 %v5552_v25, %v5550_v47  ;;  %v378_v23 = vld [vmem:[%s4822_s25 + $0x128] sm:$0x1] }
  0xa5   : > { %v1009_v43 = vsel %vm4897_vm4, %v1004_v18, %v1008_v19  ;;  %v2531_v53 = vrot.slane %v2529_v0, 5  ;;  %v3671_v37 = vcombine.low %v386_v49, %v387_v59  ;;  %v2545_v31 = vshll.u32 %v386_v49, 16 }
  0xa6   : > { %v5655_v7 = vcombine.low %v999_v17, %v1009_v43  ;;  %v1018_v4 = vrot.slane %v1017_v36, 4  ;;  %v1028_v39 = vrot.slane %v1027_v21, 4  ;;  %v2549_v11 = vshrl.u32 %v386_v49, 16  ;;  %v383_v17 = vld [vmem:[%s4822_s25 + $0x13c] sm:$0x1] }
  0xa7   : > { %v2555_v57 = vshll.u32 %v387_v59, 16  ;;  %v2559_v48 = vshrl.u32 %v387_v59, 16  ;;  %v1037_v25 = vor.u32 %v5566_v33, %v5564_v35  ;;  %v1047_v0 = vor.u32 %v5592_v52, %v5580_v6 }
  0xa8   : > { %4072 = vmatmul.mubr.msk.bf16.gmra.mrb[52].mxu1 %vm1202_vm1, %v5655_v7  ;;  %v1023_v19 = vsel %vm4897_vm4, %v1018_v4, %v5550_v47  ;;  %v2537_v26 = vrot.slane %v2535_v63, 5  ;;  %v2541_v9 = vrot.slane %v2539_v29, 4  ;;  %v1033_v49 = vsel %vm4897_vm4, %v1028_v39, %v5564_v35 }
  0xa9   : > { %4212 = vmatmul.mubr.msk.bf16.gmra.mrb[60].mxu0 %vm1202_vm1, %v3671_v37  ;;  %v2547_v18 = vrot.slane %v2545_v31, 5  ;;  %v5672_v36 = vcombine.low %v1023_v19, %v1033_v49  ;;  %v2551_v47 = vrot.slane %v2549_v11, 4  ;;  %v1038_v59 = vrot.slane %v1037_v25, 4 }
  0xaa   : > { %v1048_v43 = vrot.slane %v1047_v0, 4  ;;  %4217 = vmatprep.mubr.msk.bf16.mxu0 %vm1202_vm1, %v4942_v22  ;;  %v1050_v33 = vshll.u32 %v378_v23, 16  ;;  %v1061_v52 = vor.u32 %v5604_v58, %v5594_v55  ;;  %v1071_v63 = vor.u32 %v5616_v56, %v5611_v51 }
  0xab   : > { %v1081_v35 = vor.u32 %v1080_v14, %v5626_v45  ;;  %4075 = vmatprep.mubr.msk.bf16.mxu1 %vm1202_vm1, %v5672_v36  ;;  %v2557_v29 = vrot.slane %v2555_v57, 5  ;;  %v2561_v21 = vrot.slane %v2559_v48, 4  ;;  %v1091_v4 = vor.u32 %v1090_v2, %v5640_v40 }
  0xac   : > { %v1094_v37 = vshll.u32 %v383_v17, 16  ;;  %v1043_v22 = vsel %vm4897_vm4, %v1038_v59, %v5580_v6  ;;  %v1052_v39 = vrot.slane %v1050_v33, 5  ;;  %v1062_v55 = vrot.slane %v1061_v52, 4  ;;  %v388_v6 = vld [vmem:[%s5588_s24 + $0x10] sm:$0x1]  ;;  %s4597_s24 = sshll.u32 %s4689_s23, 4  ;;  %s4598_s24 = int_to_ptr.vmem [resolvable:$false] %s4597_s24 }
  0xad   : > { %v1072_v58 = vrot.slane %v1071_v63, 4  ;;  %v1082_v31 = vrot.slane %v1081_v35, 4  ;;  %v1092_v56 = vrot.slane %v1091_v4, 4  ;;  %v2532_v11 = vor.u32 %v2531_v53, %v2528_v15  ;;  %v4591_v52 = vld [vmem:[%s4822_s25] sm:$0xf]  ;;  %v6352_v4 = vld [vmem:[#allocation22_spill] sm:$0xff] }
  0xae   : > { %v2542_v14 = vor.u32 %v2541_v9, %v2537_v26  ;;  %v1053_v19 = vsel %vm4897_vm4, %v1048_v43, %v1052_v39  ;;  %v1067_v57 = vsel %vm4897_vm4, %v1062_v55, %v5611_v51  ;;  %v1096_v48 = vrot.slane %v1094_v37, 5  ;;  %v4592_v63 = vld [vmem:[%s4822_s25 + $0x4] sm:$0xf]  ;;  %v6356_v37 = vld [vmem:[#allocation30_spill] sm:$0xff]  ;;  %v6359_v55 = vld [vmem:[#allocation36_spill] sm:$0xff]  ;;  %s265_s25 = sand.u32 1, %s4663_s16  }
  0xaf   : > { %v1077_v2 = vsel %vm4897_vm4, %v1072_v58, %v5626_v45  ;;  %v5696_v23 = vcombine.low %v1043_v22, %v1053_v19  ;;  %v2533_v0 = vrot.slane %v2532_v11, 4  ;;  %v2552_v53 = vor.u32 %v2551_v47, %v2547_v18  ;;  %v6357_v22 = vld [vmem:[#allocation32_spill] sm:$0xff]  ;;  %v6358_v39 = vld [vmem:[#allocation34_spill] sm:$0xff]  ;;  %s3531_s5 = sshll.u32 %s265_s25, 8  ;;  %s6199_s13 = scalar_lea.sflag [#allocation3], %s265_s25 }
  0xb0   : > { %v5698_v25 = vcombine.low %v1067_v57, %v1077_v2  ;;  %v2543_v15 = vrot.slane %v2542_v14, 4  ;;  %v2562_v9 = vor.u32 %v2561_v21, %v2557_v29  ;;  %v1087_v51 = vsel %vm4897_vm4, %v1082_v31, %v5640_v40  ;;  %v6360_v58 = vld [vmem:[#allocation38_spill] sm:$0xff]  ;;  %s5867_s6 = scalar_lea.vmem [#allocation2], %s3531_s5  ;;  %s4599_s27 = scalar_lea.vmem %s4598_s24, 8192 }
  0xb1   : > { %4218 = vmatmul.mubr.msk.bf16.vlgmr.msra.gmra.mrb[0].mxu0 %vm1202_vm1, %v4988_v41  ;;  %4076 = vmatmul.mubr.msk.bf16.gmra.mrb[56].mxu1 %vm1202_vm1, %v5696_v23  ;;  %v2538_v45 = vsel %vm4897_vm4, %v2533_v0, %v2537_v26  ;;  %v2565_v49 = vshll.u32 %v388_v6, 16  ;;  %v1097_v41 = vsel %vm4897_vm4, %v1092_v56, %v1096_v48  ;;  %v2553_v47 = vrot.slane %v2552_v53, 4  ;;  %s3418_s11 = sshll.u32 %s5867_s6, 4  ;;  %s6189_s11 = int_to_ptr.vmem [resolvable:$true] %s3418_s11 }
  0xb2   : > { %4221 = vmatprep.mubr.msk.bf16.mxu0 %vm1202_vm1, %v5011_v3  ;;  %4079 = vmatprep.mubr.msk.bf16.mxu1 %vm1202_vm1, %v5698_v25  ;;  %v2548_v17 = vsel %vm4897_vm4, %v2543_v15, %v2547_v18  ;;  %v2563_v59 = vrot.slane %v2562_v9, 4  ;;  %v3569_v33 = vcombine.low %v1087_v51, %v1097_v41  ;;  %v3603_v35 = vcombine.low %v4591_v52, %v4592_v63  ;;  %v6350_v18 = vld [vmem:[#allocation18_spill] sm:$0xff]  ;;  %s4593_s14 = scalar_lea.vmem %s6189_s11, 4096  ;;  %p4600_p5 = scmp.lt.s32.totalorder %s6189_s11, %s4598_s24 }
  0xb3   : > { %v5717_v43 = vcombine.low %v2538_v45, %v2548_v17  ;;  %v2567_v40 = vrot.slane %v2565_v49, 5  ;;  %v2558_v3 = vsel %vm4897_vm4, %v2553_v47, %v2557_v29  ;;  %v6328_v8 = vcombine.low %v4857_v38, %v4876_v46  ;;  %v6331_v38 = vld [vmem:[#allocation21_spill] sm:$0xff]  ;;  %v6333_v46 = vld [vmem:[#allocation23_spill] sm:$0xff]  ;;  %v6351_v29 = vld [vmem:[#allocation20_spill] sm:$0xff]  ;;  %p4594_p1 = scmp.ne.s32.totalorder %s6189_s11, %s4593_s14  ;;  %p4601_p6 = scmp.lt.s32.totalorder %s4599_s27, %s4593_s14 }
  0xb5   : > { %v2568_v26 = vsel %vm4897_vm4, %v2563_v59, %v2567_v40  ;;  %p4595_p2 = pnand %p4594_p1, %p4768_p3  ;;  %p4602_p7 = por %p4601_p6, %p4600_p5 }
  0xb6   : > { %v3708_v21 = vcombine.low %v2558_v3, %v2568_v26 }
  0xb7   : > { %p4596_p4 = pneg %p4595_p2 }
  0xb9   : > { %4222 = vmatmul.mubr.msk.bf16.gmra.mrb[4].mxu0 %vm1202_vm1, %v5044_v27  ;;  %4080 = vmatmul.mubr.msk.bf16.gmra.mrb[60].mxu1 %vm1202_vm1, %v3569_v33  ;;  %v6339_v27 = vld [vmem:[#allocation29_spill] sm:$0xff]  ;;  %p4603_p9 = pnand %p4602_p7, %p4596_p4 }
  0xba   : > { %4225 = vmatprep.mubr.msk.bf16.mxu0 %vm1202_vm1, %v5073_v12  ;;  %4085 = vmatprep.mubr.msk.bf16.mxu1 %vm1202_vm1, %v3603_v35  ;;  %v6340_v12 = vld [vmem:[#allocation12_spill] sm:$0xff] }
  0xc1   : > { %4226 = vmatmul.mubr.msk.bf16.gmra.mrb[8].mxu0 %vm1202_vm1, %v5096_v44  ;;  %4086 = vmatmul.mubr.msk.bf16.vlgmr.msra.gmra.mrb[0].mxu1 %vm1202_vm1, %v6328_v8  ;;  %v6341_v44 = vld [vmem:[#allocation31_spill] sm:$0xff] }
  0xc2   : > { %4229 = vmatprep.mubr.msk.bf16.mxu0 %vm1202_vm1, %v5129_v13  ;;  %4089 = vmatprep.mubr.msk.bf16.mxu1 %vm1202_vm1, %v4832_v16  ;;  %v6329_v16 = vld [vmem:[#allocation19_spill] sm:$0xff]  ;;  %v6342_v13 = vld [vmem:[#allocation13_spill] sm:$0xff] }
  0xc9   : > { %4230 = vmatmul.mubr.msk.bf16.gmra.mrb[12].mxu0 %vm1202_vm1, %v5154_v61  ;;  %4090 = vmatmul.mubr.msk.bf16.gmra.mrb[4].mxu1 %vm1202_vm1, %v4849_v32  ;;  %v6330_v32 = vld [vmem:[#allocation7_spill] sm:$0xff]  ;;  %v6343_v61 = vld [vmem:[#allocation33_spill] sm:$0xff] }
  0xca   : > { %4233 = vmatprep.mubr.msk.bf16.mxu0 %vm1202_vm1, %v5185_v24  ;;  %4093 = vmatprep.mubr.msk.bf16.mxu1 %vm1202_vm1, %v4863_v42  ;;  %v6332_v42 = vld [vmem:[#allocation8_spill] sm:$0xff]  ;;  %v6344_v24 = vld [vmem:[#allocation14_spill] sm:$0xff] }
  0xd1   : > { %4234 = vmatmul.mubr.msk.bf16.gmra.mrb[16].mxu0 %vm1202_vm1, %v5208_v10  ;;  %4094 = vmatmul.mubr.msk.bf16.gmra.mrb[8].mxu1 %vm1202_vm1, %v4892_v5  ;;  %v6334_v5 = vld [vmem:[#allocation9_spill] sm:$0xff]  ;;  %v6345_v10 = vld [vmem:[#allocation35_spill] sm:$0xff] }
  0xd2   : > { %4237 = vmatprep.mubr.msk.bf16.mxu0 %vm1202_vm1, %v5241_v30  ;;  %4097 = vmatprep.mubr.msk.bf16.mxu1 %vm1202_vm1, %v4921_v50  ;;  %v6335_v50 = vld [vmem:[#allocation25_spill] sm:$0xff]  ;;  %v6346_v30 = vld [vmem:[#allocation15_spill] sm:$0xff] }
  0xd9   : > { %4238 = vmatmul.mubr.msk.bf16.gmra.mrb[20].mxu0 %vm1202_vm1, %v5266_v60  ;;  %4098 = vmatmul.mubr.msk.bf16.gmra.mrb[12].mxu1 %vm1202_vm1, %v4947_v1  ;;  %v6336_v1 = vld [vmem:[#allocation10_spill] sm:$0xff]  ;;  %v6347_v60 = vld [vmem:[#allocation37_spill] sm:$0xff] }
  0xda   : > { %4241 = vmatprep.mubr.msk.bf16.mxu0 %vm1202_vm1, %v5297_v62  ;;  %4101 = vmatprep.mubr.msk.bf16.mxu1 %vm1202_vm1, %v4962_v20  ;;  %v6337_v20 = vld [vmem:[#allocation27_spill] sm:$0xff]  ;;  %v6348_v62 = vld [vmem:[#allocation16_spill] sm:$0xff] }
  0xe1   : > { %4242 = vmatmul.mubr.msk.bf16.gmra.mrb[24].mxu0 %vm1202_vm1, %v5320_v28  ;;  %4102 = vmatmul.mubr.msk.bf16.gmra.mrb[16].mxu1 %vm1202_vm1, %v4998_v54  ;;  %v6338_v54 = vld [vmem:[#allocation11_spill] sm:$0xff]  ;;  %v6349_v28 = vld [vmem:[#allocation17_spill] sm:$0xff] }
  0xe2   : > { %4245 = vmatprep.mubr.msk.bf16.mxu0 %vm1202_vm1, %v6329_v16  ;;  %4105 = vmatprep.mubr.msk.bf16.mxu1 %vm1202_vm1, %v6330_v32 }
  0xe9   : > { %4246 = vmatmul.mubr.msk.bf16.gmra.mrb[28].mxu0 %vm1202_vm1, %v6331_v38  ;;  %4106 = vmatmul.mubr.msk.bf16.gmra.mrb[20].mxu1 %vm1202_vm1, %v6332_v42 }
  0xea   : > { %4249 = vmatprep.mubr.msk.bf16.mxu0 %vm1202_vm1, %v6333_v46  ;;  %4109 = vmatprep.mubr.msk.bf16.mxu1 %vm1202_vm1, %v6334_v5 }
  0xf1   : > { %4250 = vmatmul.mubr.msk.bf16.gmra.mrb[32].mxu0 %vm1202_vm1, %v6335_v50  ;;  %4110 = vmatmul.mubr.msk.bf16.gmra.mrb[24].mxu1 %vm1202_vm1, %v6336_v1 }
  0xf2   : > { %4253 = vmatprep.mubr.msk.bf16.mxu0 %vm1202_vm1, %v6337_v20  ;;  %4113 = vmatprep.mubr.msk.bf16.mxu1 %vm1202_vm1, %v6338_v54 }
  0xf9   : > { %4254 = vmatmul.mubr.msk.bf16.gmra.mrb[36].mxu0 %vm1202_vm1, %v6339_v27  ;;  %4114 = vmatmul.mubr.msk.bf16.gmra.mrb[28].mxu1 %vm1202_vm1, %v6340_v12 }
  0xfa   : > { %4257 = vmatprep.mubr.msk.bf16.mxu0 %vm1202_vm1, %v6341_v44  ;;  %4117 = vmatprep.mubr.msk.bf16.mxu1 %vm1202_vm1, %v6342_v13 }
 0x101   : > { %4258 = vmatmul.mubr.msk.bf16.gmra.mrb[40].mxu0 %vm1202_vm1, %v6343_v61  ;;  %4118 = vmatmul.mubr.msk.bf16.gmra.mrb[32].mxu1 %vm1202_vm1, %v6344_v24 }
 0x102   : > { %4261 = vmatprep.mubr.msk.bf16.mxu0 %vm1202_vm1, %v6345_v10  ;;  %4121 = vmatprep.mubr.msk.bf16.mxu1 %vm1202_vm1, %v6346_v30 }
 0x109   : > { %4262 = vmatmul.mubr.msk.bf16.gmra.mrb[44].mxu0 %vm1202_vm1, %v6347_v60  ;;  %4122 = vmatmul.mubr.msk.bf16.gmra.mrb[36].mxu1 %vm1202_vm1, %v6348_v62 }
 0x10a   : > { %4265 = vmatprep.mubr.msk.bf16.mxu0 %vm1202_vm1, %v5637_v34  ;;  %4125 = vmatprep.mubr.msk.bf16.mxu1 %vm1202_vm1, %v6349_v28  ;;  %v6353_v34 = vld [vmem:[#allocation24_spill] sm:$0xff] }
 0x111   : > { %4266 = vmatmul.mubr.msk.bf16.gmra.mrb[48].mxu0 %vm1202_vm1, %v5655_v7  ;;  %4126 = vmatmul.mubr.msk.bf16.gmra.mrb[40].mxu1 %vm1202_vm1, %v6350_v18  ;;  %v6354_v7 = vld [vmem:[#allocation26_spill] sm:$0xff] }
 0x112   : > { %4269 = vmatprep.mubr.msk.bf16.mxu0 %vm1202_vm1, %v5672_v36  ;;  %4129 = vmatprep.mubr.msk.bf16.mxu1 %vm1202_vm1, %v6351_v29  ;;  %v6355_v36 = vld [vmem:[#allocation28_spill] sm:$0xff] }
 0x119   : > { %4270 = vmatmul.mubr.msk.bf16.gmra.mrb[52].mxu0 %vm1202_vm1, %v5696_v23  ;;  %4130 = vmatmul.mubr.msk.bf16.gmra.mrb[44].mxu1 %vm1202_vm1, %v6352_v4 }
 0x11a   : > { %4273 = vmatprep.mubr.msk.bf16.mxu0 %vm1202_vm1, %v5698_v25  ;;  %4133 = vmatprep.mubr.msk.bf16.mxu1 %vm1202_vm1, %v6353_v34  ;;  %v5851_v25 = vld [vmem:[%s6254_s3] ss:$0 sm:$0xff] }
 0x121   : > { %4274 = vmatmul.mubr.msk.bf16.gmra.mrb[56].mxu0 %vm1202_vm1, %v3569_v33  ;;  %4134 = vmatmul.mubr.msk.bf16.gmra.mrb[48].mxu1 %vm1202_vm1, %v6354_v7 }
 0x122   : > { %4277 = vmatprep.mubr.msk.bf16.mxu0 %vm1202_vm1, %v5717_v43  ;;  %4137 = vmatprep.mubr.msk.bf16.mxu1 %vm1202_vm1, %v6355_v36 }
 0x129   : > { %4278 = vmatmul.mubr.msk.bf16.gmra.mrb[60].mxu0 %vm1202_vm1, %v3708_v21  ;;  %4138 = vmatmul.mubr.msk.bf16.gmra.mrb[52].mxu1 %vm1202_vm1, %v6356_v37 }
 0x12a   : > { %4141 = vmatprep.mubr.msk.bf16.mxu1 %vm1202_vm1, %v6357_v22 }
 0x131   : > { %4142 = vmatmul.mubr.msk.bf16.gmra.mrb[56].mxu1 %vm1202_vm1, %v6358_v39 }
 0x132   : > { %4145 = vmatprep.mubr.msk.bf16.mxu1 %vm1202_vm1, %v6359_v55 }
 0x139   : > { %4146 = vmatmul.mubr.msk.bf16.gmra.mrb[60].mxu1 %vm1202_vm1, %v6360_v58 }
 0x184   : > { %v4219_v31 = vpop.f32.mrb[0].mxu0 }
 0x185   : > { %v2626_v56 = vpop.f32.mrb[1].mxu0 }
 0x186   : > { %v4220_v11 = vpop.f32.mrb[2].mxu0 }
 0x187   : > { %v2629_v14 = vpop.f32.mrb[3].mxu0 }
 0x18c   : > { %v4223_v19 = vpop.f32.mrb[4].mxu0 }
 0x18d   : > { %v2642_v57 = vpop.f32.mrb[5].mxu0 }
 0x18e   : > { %v4224_v2 = vpop.f32.mrb[6].mxu0 }
 0x18f   : > { %v2645_v48 = vpop.f32.mrb[7].mxu0 }
 0x194   : > { %v4227_v6 = vpop.f32.mrb[8].mxu0  ;;  %v4087_v23 = vpop.f32.mrb[0].mxu1 }
 0x195   : > { %v2658_v0 = vpop.f32.mrb[9].mxu0  ;;  %v4281_v15 = vadd.f32 %v4219_v31, %v4087_v23  ;;  %v1890_v53 = vpop.f32.mrb[1].mxu1 }
 0x196   : > { %v5853_v9 = vpop.f32.mrb[10].mxu0  ;;  %v4282_v51 = vadd.f32 %v2626_v56, %v1890_v53  ;;  %v4088_v45 = vpop.f32.mrb[2].mxu1 }
 0x197   : > { %v5855_v49 = vpop.f32.mrb[11].mxu0  ;;  %v2954_v41 = vadd.f32 %v4281_v15, %v5851_v25  ;;  %v4283_v17 = vadd.f32 %v4220_v11, %v4088_v45  ;;  %v1893_v47 = vpop.f32.mrb[3].mxu1 }
 0x198   : > { %v2952_v59 = vadd.f32 %v4282_v51, %v5851_v25  ;;  %v4284_v43 = vadd.f32 %v2629_v14, %v1893_v47 }
 0x199   : > { %v3018_v40 = vmax.f32 %v2954_v41, 0.0  ;;  %v2955_v3 = vadd.f32 %v4283_v17, %v5851_v25 }
 0x19a   : > { %v3016_v33 = vmax.f32 %v2952_v59, 0.0  ;;  %v2953_v26 = vadd.f32 %v4284_v43, %v5851_v25 }
 0x19b   : > { %v3822_v52 = vpack.c.bf16 %v3018_v40, %v3018_v40  ;;  %v3019_v63 = vmax.f32 %v2955_v3, 0.0 }
 0x19c   : > { %v5863_v35 = vpop.f32.mrb[12].mxu0  ;;  %v3820_v21 = vpack.c.bf16 %v3016_v33, %v3016_v33  ;;  %v3017_v8 = vmax.f32 %v2953_v26, 0.0  ;;  %v4091_v16 = vpop.f32.mrb[4].mxu1 }
 0x19d   : > { %v5865_v32 = vpop.f32.mrb[13].mxu0  ;;  %3339 = vst.msk [vmem:[%s5867_s6 + $0x8] sm:$0xf] %vm3336_vm5, %v3822_v52  ;;  %v3823_v38 = vpack.c.bf16 %v3019_v63, %v3019_v63  ;;  %v4285_v42 = vadd.f32 %v4223_v19, %v4091_v16  ;;  %v1906_v46 = vpop.f32.mrb[5].mxu1 }
 0x19e   : > { %v5871_v5 = vpop.f32.mrb[14].mxu0  ;;  %3337 = vst.msk [vmem:[%s5867_s6] sm:$0xf] %vm3336_vm5, %v3820_v21  ;;  %v3821_v50 = vpack.c.bf16 %v3017_v8, %v3017_v8  ;;  %v4286_v1 = vadd.f32 %v2642_v57, %v1906_v46  ;;  %v4092_v20 = vpop.f32.mrb[6].mxu1 }
 0x19f   : > { %v5875_v54 = vpop.f32.mrb[15].mxu0  ;;  %3340 = vst.msk [vmem:[%s5867_s6 + $0xc] sm:$0xf] %vm3336_vm5, %v3823_v38  ;;  %v2958_v27 = vadd.f32 %v4285_v42, %v5851_v25  ;;  %v4287_v12 = vadd.f32 %v4224_v2, %v4092_v20  ;;  %v1909_v44 = vpop.f32.mrb[7].mxu1 }
 0x1a0   : > { %3338 = vst.msk [vmem:[%s5867_s6 + $0x4] sm:$0xf] %vm3336_vm5, %v3821_v50  ;;  %v2956_v13 = vadd.f32 %v4286_v1, %v5851_v25  ;;  %v4288_v61 = vadd.f32 %v2645_v48, %v1909_v44 }
 0x1a1   : > { %v3022_v24 = vmax.f32 %v2958_v27, 0.0  ;;  %v2959_v10 = vadd.f32 %v4287_v12, %v5851_v25 }
 0x1a2   : > { %v3020_v30 = vmax.f32 %v2956_v13, 0.0  ;;  %v2957_v60 = vadd.f32 %v4288_v61, %v5851_v25 }
 0x1a3   : > { %v3826_v62 = vpack.c.bf16 %v3022_v24, %v3022_v24  ;;  %v3023_v28 = vmax.f32 %v2959_v10, 0.0 }
 0x1a4   : > { %v5885_v18 = vpop.f32.mrb[16].mxu0  ;;  %v3824_v29 = vpack.c.bf16 %v3020_v30, %v3020_v30  ;;  %v3021_v4 = vmax.f32 %v2957_v60, 0.0  ;;  %v4095_v34 = vpop.f32.mrb[8].mxu1 }
 0x1a5   : > { %v5887_v7 = vpop.f32.mrb[17].mxu0  ;;  %3343 = vst.msk [vmem:[%s5867_s6 + $0x18] sm:$0xf] %vm3336_vm5, %v3826_v62  ;;  %v3827_v36 = vpack.c.bf16 %v3023_v28, %v3023_v28  ;;  %v4289_v37 = vadd.f32 %v4227_v6, %v4095_v34  ;;  %v1922_v22 = vpop.f32.mrb[9].mxu1 }
 0x1a6   : > { %v5891_v39 = vpop.f32.mrb[18].mxu0  ;;  %3341 = vst.msk [vmem:[%s5867_s6 + $0x10] sm:$0xf] %vm3336_vm5, %v3824_v29  ;;  %v3825_v55 = vpack.c.bf16 %v3021_v4, %v3021_v4  ;;  %v4290_v58 = vadd.f32 %v2658_v0, %v1922_v22  ;;  %v4096_v31 = vpop.f32.mrb[10].mxu1 }
 0x1a7   : > { %v5895_v56 = vpop.f32.mrb[19].mxu0  ;;  %3344 = vst.msk [vmem:[%s5867_s6 + $0x1c] sm:$0xf] %vm3336_vm5, %v3827_v36  ;;  %v2962_v11 = vadd.f32 %v4289_v37, %v5851_v25  ;;  %v4291_v14 = vadd.f32 %v5853_v9, %v4096_v31  ;;  %v1925_v19 = vpop.f32.mrb[11].mxu1 }
 0x1a8   : > { %3342 = vst.msk [vmem:[%s5867_s6 + $0x14] sm:$0xf] %vm3336_vm5, %v3825_v55  ;;  %v2960_v57 = vadd.f32 %v4290_v58, %v5851_v25  ;;  %v4292_v2 = vadd.f32 %v5855_v49, %v1925_v19 }
 0x1a9   : > { %v3026_v48 = vmax.f32 %v2962_v11, 0.0  ;;  %v2963_v6 = vadd.f32 %v4291_v14, %v5851_v25 }
 0x1aa   : > { %v3024_v23 = vmax.f32 %v2960_v57, 0.0  ;;  %v2961_v0 = vadd.f32 %v4292_v2, %v5851_v25 }
 0x1ab   : > { %v3830_v15 = vpack.c.bf16 %v3026_v48, %v3026_v48  ;;  %v3027_v53 = vmax.f32 %v2963_v6, 0.0 }
 0x1ac   : > { %v5907_v51 = vpop.f32.mrb[20].mxu0  ;;  %v3828_v9 = vpack.c.bf16 %v3024_v23, %v3024_v23  ;;  %v3025_v45 = vmax.f32 %v2961_v0, 0.0  ;;  %v4099_v41 = vpop.f32.mrb[12].mxu1 }
 0x1ad   : > { %v5909_v17 = vpop.f32.mrb[21].mxu0  ;;  %3347 = vst.msk [vmem:[%s5867_s6 + $0x28] sm:$0xf] %vm3336_vm5, %v3830_v15  ;;  %v3831_v49 = vpack.c.bf16 %v3027_v53, %v3027_v53  ;;  %v4293_v47 = vadd.f32 %v5863_v35, %v4099_v41  ;;  %v1938_v59 = vpop.f32.mrb[13].mxu1 }
 0x1ae   : > { %v5914_v43 = vpop.f32.mrb[22].mxu0  ;;  %3345 = vst.msk [vmem:[%s5867_s6 + $0x20] sm:$0xf] %vm3336_vm5, %v3828_v9  ;;  %v3829_v40 = vpack.c.bf16 %v3025_v45, %v3025_v45  ;;  %v4294_v3 = vadd.f32 %v5865_v32, %v1938_v59  ;;  %v4100_v33 = vpop.f32.mrb[14].mxu1 }
 0x1af   : > { %v5919_v26 = vpop.f32.mrb[23].mxu0  ;;  %3348 = vst.msk [vmem:[%s5867_s6 + $0x2c] sm:$0xf] %vm3336_vm5, %v3831_v49  ;;  %v2966_v52 = vadd.f32 %v4293_v47, %v5851_v25  ;;  %v4295_v63 = vadd.f32 %v5871_v5, %v4100_v33  ;;  %v1941_v21 = vpop.f32.mrb[15].mxu1 }
 0x1b0   : > { %3346 = vst.msk [vmem:[%s5867_s6 + $0x24] sm:$0xf] %vm3336_vm5, %v3829_v40  ;;  %v2964_v35 = vadd.f32 %v4294_v3, %v5851_v25  ;;  %v4296_v8 = vadd.f32 %v5875_v54, %v1941_v21 }
 0x1b1   : > { %v3030_v16 = vmax.f32 %v2966_v52, 0.0  ;;  %v2967_v32 = vadd.f32 %v4295_v63, %v5851_v25 }
 0x1b2   : > { %v3028_v38 = vmax.f32 %v2964_v35, 0.0  ;;  %v2965_v42 = vadd.f32 %v4296_v8, %v5851_v25 }
 0x1b3   : > { %v3834_v46 = vpack.c.bf16 %v3030_v16, %v3030_v16  ;;  %v3031_v50 = vmax.f32 %v2967_v32, 0.0 }
 0x1b4   : > { %v5931_v1 = vpop.f32.mrb[24].mxu0  ;;  %v3832_v5 = vpack.c.bf16 %v3028_v38, %v3028_v38  ;;  %v3029_v20 = vmax.f32 %v2965_v42, 0.0  ;;  %v4103_v27 = vpop.f32.mrb[16].mxu1 }
 0x1b5   : > { %v5933_v12 = vpop.f32.mrb[25].mxu0  ;;  %3351 = vst.msk [vmem:[%s5867_s6 + $0x38] sm:$0xf] %vm3336_vm5, %v3834_v46  ;;  %v3835_v54 = vpack.c.bf16 %v3031_v50, %v3031_v50  ;;  %v4297_v44 = vadd.f32 %v5885_v18, %v4103_v27  ;;  %v1954_v13 = vpop.f32.mrb[17].mxu1 }
 0x1b6   : > { %v5938_v61 = vpop.f32.mrb[26].mxu0  ;;  %3349 = vst.msk [vmem:[%s5867_s6 + $0x30] sm:$0xf] %vm3336_vm5, %v3832_v5  ;;  %v3833_v24 = vpack.c.bf16 %v3029_v20, %v3029_v20  ;;  %v4298_v10 = vadd.f32 %v5887_v7, %v1954_v13  ;;  %v4104_v30 = vpop.f32.mrb[18].mxu1 }
 0x1b7   : > { %v5943_v60 = vpop.f32.mrb[27].mxu0  ;;  %3352 = vst.msk [vmem:[%s5867_s6 + $0x3c] sm:$0xf] %vm3336_vm5, %v3835_v54  ;;  %v2970_v62 = vadd.f32 %v4297_v44, %v5851_v25  ;;  %v4299_v28 = vadd.f32 %v5891_v39, %v4104_v30  ;;  %v1957_v29 = vpop.f32.mrb[19].mxu1 }
 0x1b8   : > { %3350 = vst.msk [vmem:[%s5867_s6 + $0x34] sm:$0xf] %vm3336_vm5, %v3833_v24  ;;  %v2968_v18 = vadd.f32 %v4298_v10, %v5851_v25  ;;  %v4300_v4 = vadd.f32 %v5895_v56, %v1957_v29 }
 0x1b9   : > { %v3034_v34 = vmax.f32 %v2970_v62, 0.0  ;;  %v2971_v7 = vadd.f32 %v4299_v28, %v5851_v25 }
 0x1ba   : > { %v3032_v36 = vmax.f32 %v2968_v18, 0.0  ;;  %v2969_v37 = vadd.f32 %v4300_v4, %v5851_v25 }
 0x1bb   : > { %v3838_v22 = vpack.c.bf16 %v3034_v34, %v3034_v34  ;;  %v3035_v55 = vmax.f32 %v2971_v7, 0.0 }
 0x1bc   : > { %v5955_v58 = vpop.f32.mrb[28].mxu0  ;;  %v3836_v39 = vpack.c.bf16 %v3032_v36, %v3032_v36  ;;  %v3033_v31 = vmax.f32 %v2969_v37, 0.0  ;;  %v4107_v11 = vpop.f32.mrb[20].mxu1 }
 0x1bd   : > { %v5957_v14 = vpop.f32.mrb[29].mxu0  ;;  %3355 = vst.msk [vmem:[%s5867_s6 + $0x48] sm:$0xf] %vm3336_vm5, %v3838_v22  ;;  %v3839_v56 = vpack.c.bf16 %v3035_v55, %v3035_v55  ;;  %v4301_v19 = vadd.f32 %v5907_v51, %v4107_v11  ;;  %v1970_v57 = vpop.f32.mrb[21].mxu1 }
 0x1be   : > { %v5962_v2 = vpop.f32.mrb[30].mxu0  ;;  %3353 = vst.msk [vmem:[%s5867_s6 + $0x40] sm:$0xf] %vm3336_vm5, %v3836_v39  ;;  %v3837_v48 = vpack.c.bf16 %v3033_v31, %v3033_v31  ;;  %v4302_v6 = vadd.f32 %v5909_v17, %v1970_v57  ;;  %v4108_v23 = vpop.f32.mrb[22].mxu1 }
 0x1bf   : > { %v5967_v0 = vpop.f32.mrb[31].mxu0  ;;  %3356 = vst.msk [vmem:[%s5867_s6 + $0x4c] sm:$0xf] %vm3336_vm5, %v3839_v56  ;;  %v2974_v15 = vadd.f32 %v4301_v19, %v5851_v25  ;;  %v4303_v53 = vadd.f32 %v5914_v43, %v4108_v23  ;;  %v1973_v9 = vpop.f32.mrb[23].mxu1 }
 0x1c0   : > { %3354 = vst.msk [vmem:[%s5867_s6 + $0x44] sm:$0xf] %vm3336_vm5, %v3837_v48  ;;  %v2972_v51 = vadd.f32 %v4302_v6, %v5851_v25  ;;  %v4304_v45 = vadd.f32 %v5919_v26, %v1973_v9 }
 0x1c1   : > { %v3038_v41 = vmax.f32 %v2974_v15, 0.0  ;;  %v2975_v17 = vadd.f32 %v4303_v53, %v5851_v25 }
 0x1c2   : > { %v3036_v49 = vmax.f32 %v2972_v51, 0.0  ;;  %v2973_v47 = vadd.f32 %v4304_v45, %v5851_v25 }
 0x1c3   : > { %v3842_v59 = vpack.c.bf16 %v3038_v41, %v3038_v41  ;;  %v3039_v40 = vmax.f32 %v2975_v17, 0.0 }
 0x1c4   : > { %v5979_v3 = vpop.f32.mrb[32].mxu0  ;;  %v3840_v43 = vpack.c.bf16 %v3036_v49, %v3036_v49  ;;  %v3037_v33 = vmax.f32 %v2973_v47, 0.0  ;;  %v4111_v52 = vpop.f32.mrb[24].mxu1 }
 0x1c5   : > { %v5981_v63 = vpop.f32.mrb[33].mxu0  ;;  %3359 = vst.msk [vmem:[%s5867_s6 + $0x58] sm:$0xf] %vm3336_vm5, %v3842_v59  ;;  %v3843_v26 = vpack.c.bf16 %v3039_v40, %v3039_v40  ;;  %v4305_v21 = vadd.f32 %v5931_v1, %v4111_v52  ;;  %v1986_v35 = vpop.f32.mrb[25].mxu1 }
 0x1c6   : > { %v5986_v8 = vpop.f32.mrb[34].mxu0  ;;  %3357 = vst.msk [vmem:[%s5867_s6 + $0x50] sm:$0xf] %vm3336_vm5, %v3840_v43  ;;  %v3841_v16 = vpack.c.bf16 %v3037_v33, %v3037_v33  ;;  %v4306_v32 = vadd.f32 %v5933_v12, %v1986_v35  ;;  %v4112_v38 = vpop.f32.mrb[26].mxu1 }
 0x1c7   : > { %v5991_v42 = vpop.f32.mrb[35].mxu0  ;;  %3360 = vst.msk [vmem:[%s5867_s6 + $0x5c] sm:$0xf] %vm3336_vm5, %v3843_v26  ;;  %v2978_v46 = vadd.f32 %v4305_v21, %v5851_v25  ;;  %v4307_v50 = vadd.f32 %v5938_v61, %v4112_v38  ;;  %v1989_v5 = vpop.f32.mrb[27].mxu1 }
 0x1c8   : > { %3358 = vst.msk [vmem:[%s5867_s6 + $0x54] sm:$0xf] %vm3336_vm5, %v3841_v16  ;;  %v2976_v1 = vadd.f32 %v4306_v32, %v5851_v25  ;;  %v4308_v20 = vadd.f32 %v5943_v60, %v1989_v5 }
 0x1c9   : > { %v3042_v27 = vmax.f32 %v2978_v46, 0.0  ;;  %v2979_v12 = vadd.f32 %v4307_v50, %v5851_v25 }
 0x1ca   : > { %v3040_v54 = vmax.f32 %v2976_v1, 0.0  ;;  %v2977_v44 = vadd.f32 %v4308_v20, %v5851_v25 }
 0x1cb   : > { %v3846_v13 = vpack.c.bf16 %v3042_v27, %v3042_v27  ;;  %v3043_v24 = vmax.f32 %v2979_v12, 0.0 }
 0x1cc   : > { %v6003_v10 = vpop.f32.mrb[36].mxu0  ;;  %v3844_v61 = vpack.c.bf16 %v3040_v54, %v3040_v54  ;;  %v3041_v30 = vmax.f32 %v2977_v44, 0.0  ;;  %v4115_v62 = vpop.f32.mrb[28].mxu1 }
 0x1cd   : > { %v6005_v28 = vpop.f32.mrb[37].mxu0  ;;  %3363 = vst.msk [vmem:[%s5867_s6 + $0x68] sm:$0xf] %vm3336_vm5, %v3846_v13  ;;  %v3847_v60 = vpack.c.bf16 %v3043_v24, %v3043_v24  ;;  %v4309_v29 = vadd.f32 %v5955_v58, %v4115_v62  ;;  %v2002_v18 = vpop.f32.mrb[29].mxu1 }
 0x1ce   : > { %v6010_v4 = vpop.f32.mrb[38].mxu0  ;;  %3361 = vst.msk [vmem:[%s5867_s6 + $0x60] sm:$0xf] %vm3336_vm5, %v3844_v61  ;;  %v3845_v34 = vpack.c.bf16 %v3041_v30, %v3041_v30  ;;  %v4310_v7 = vadd.f32 %v5957_v14, %v2002_v18  ;;  %v4116_v36 = vpop.f32.mrb[30].mxu1 }
 0x1cf   : > { %v6015_v37 = vpop.f32.mrb[39].mxu0  ;;  %3364 = vst.msk [vmem:[%s5867_s6 + $0x6c] sm:$0xf] %vm3336_vm5, %v3847_v60  ;;  %v2982_v22 = vadd.f32 %v4309_v29, %v5851_v25  ;;  %v4311_v55 = vadd.f32 %v5962_v2, %v4116_v36  ;;  %v2005_v39 = vpop.f32.mrb[31].mxu1 }
 0x1d0   : > { %3362 = vst.msk [vmem:[%s5867_s6 + $0x64] sm:$0xf] %vm3336_vm5, %v3845_v34  ;;  %v2980_v58 = vadd.f32 %v4310_v7, %v5851_v25  ;;  %v4312_v31 = vadd.f32 %v5967_v0, %v2005_v39 }
 0x1d1   : > { %v3046_v11 = vmax.f32 %v2982_v22, 0.0  ;;  %v2983_v14 = vadd.f32 %v4311_v55, %v5851_v25 }
 0x1d2   : > { %v3044_v56 = vmax.f32 %v2980_v58, 0.0  ;;  %v2981_v19 = vadd.f32 %v4312_v31, %v5851_v25 }
 0x1d3   : > { %v3850_v57 = vpack.c.bf16 %v3046_v11, %v3046_v11  ;;  %v3047_v48 = vmax.f32 %v2983_v14, 0.0 }
 0x1d4   : > { %v6027_v6 = vpop.f32.mrb[40].mxu0  ;;  %v3848_v2 = vpack.c.bf16 %v3044_v56, %v3044_v56  ;;  %v3045_v23 = vmax.f32 %v2981_v19, 0.0  ;;  %v4119_v15 = vpop.f32.mrb[32].mxu1 }
 0x1d5   : > { %v6029_v53 = vpop.f32.mrb[41].mxu0  ;;  %3367 = vst.msk [vmem:[%s5867_s6 + $0x78] sm:$0xf] %vm3336_vm5, %v3850_v57  ;;  %v3851_v0 = vpack.c.bf16 %v3047_v48, %v3047_v48  ;;  %v4313_v9 = vadd.f32 %v5979_v3, %v4119_v15  ;;  %v2018_v51 = vpop.f32.mrb[33].mxu1 }
 0x1d6   : > { %v6034_v45 = vpop.f32.mrb[42].mxu0  ;;  %3365 = vst.msk [vmem:[%s5867_s6 + $0x70] sm:$0xf] %vm3336_vm5, %v3848_v2  ;;  %v3849_v41 = vpack.c.bf16 %v3045_v23, %v3045_v23  ;;  %v4314_v17 = vadd.f32 %v5981_v63, %v2018_v51  ;;  %v4120_v49 = vpop.f32.mrb[34].mxu1 }
 0x1d7   : > { %v6039_v47 = vpop.f32.mrb[43].mxu0  ;;  %3368 = vst.msk [vmem:[%s5867_s6 + $0x7c] sm:$0xf] %vm3336_vm5, %v3851_v0  ;;  %v2986_v59 = vadd.f32 %v4313_v9, %v5851_v25  ;;  %v4315_v40 = vadd.f32 %v5986_v8, %v4120_v49  ;;  %v2021_v43 = vpop.f32.mrb[35].mxu1 }
 0x1d8   : > { %3366 = vst.msk [vmem:[%s5867_s6 + $0x74] sm:$0xf] %vm3336_vm5, %v3849_v41  ;;  %v2984_v3 = vadd.f32 %v4314_v17, %v5851_v25  ;;  %v4316_v33 = vadd.f32 %v5991_v42, %v2021_v43 }
 0x1d9   : > { %v3050_v52 = vmax.f32 %v2986_v59, 0.0  ;;  %v2987_v63 = vadd.f32 %v4315_v40, %v5851_v25 }
 0x1da   : > { %v3048_v26 = vmax.f32 %v2984_v3, 0.0  ;;  %v2985_v21 = vadd.f32 %v4316_v33, %v5851_v25 }
 0x1db   : > { %v3854_v35 = vpack.c.bf16 %v3050_v52, %v3050_v52  ;;  %v3051_v16 = vmax.f32 %v2987_v63, 0.0 }
 0x1dc   : > { %v6051_v32 = vpop.f32.mrb[44].mxu0  ;;  %v3852_v8 = vpack.c.bf16 %v3048_v26, %v3048_v26  ;;  %v3049_v38 = vmax.f32 %v2985_v21, 0.0  ;;  %v4123_v46 = vpop.f32.mrb[36].mxu1 }
 0x1dd   : > { %v6053_v50 = vpop.f32.mrb[45].mxu0  ;;  %3371 = vst.msk [vmem:[%s5867_s6 + $0x88] sm:$0xf] %vm3336_vm5, %v3854_v35  ;;  %v3855_v42 = vpack.c.bf16 %v3051_v16, %v3051_v16  ;;  %v4317_v5 = vadd.f32 %v6003_v10, %v4123_v46  ;;  %v2034_v1 = vpop.f32.mrb[37].mxu1 }
 0x1de   : > { %v6058_v20 = vpop.f32.mrb[46].mxu0  ;;  %3369 = vst.msk [vmem:[%s5867_s6 + $0x80] sm:$0xf] %vm3336_vm5, %v3852_v8  ;;  %v3853_v27 = vpack.c.bf16 %v3049_v38, %v3049_v38  ;;  %v4318_v12 = vadd.f32 %v6005_v28, %v2034_v1  ;;  %v4124_v54 = vpop.f32.mrb[38].mxu1 }
 0x1df   : > { %v6063_v44 = vpop.f32.mrb[47].mxu0  ;;  %3372 = vst.msk [vmem:[%s5867_s6 + $0x8c] sm:$0xf] %vm3336_vm5, %v3855_v42  ;;  %v2990_v13 = vadd.f32 %v4317_v5, %v5851_v25  ;;  %v4319_v24 = vadd.f32 %v6010_v4, %v4124_v54  ;;  %v2037_v61 = vpop.f32.mrb[39].mxu1 }
 0x1e0   : > { %3370 = vst.msk [vmem:[%s5867_s6 + $0x84] sm:$0xf] %vm3336_vm5, %v3853_v27  ;;  %v2988_v10 = vadd.f32 %v4318_v12, %v5851_v25  ;;  %v4320_v30 = vadd.f32 %v6015_v37, %v2037_v61 }
 0x1e1   : > { %v3054_v62 = vmax.f32 %v2990_v13, 0.0  ;;  %v2991_v28 = vadd.f32 %v4319_v24, %v5851_v25 }
 0x1e2   : > { %v3052_v60 = vmax.f32 %v2988_v10, 0.0  ;;  %v2989_v29 = vadd.f32 %v4320_v30, %v5851_v25 }
 0x1e3   : > { %v3858_v18 = vpack.c.bf16 %v3054_v62, %v3054_v62  ;;  %v3055_v34 = vmax.f32 %v2991_v28, 0.0 }
 0x1e4   : > { %v6075_v7 = vpop.f32.mrb[48].mxu0  ;;  %v3856_v4 = vpack.c.bf16 %v3052_v60, %v3052_v60  ;;  %v3053_v36 = vmax.f32 %v2989_v29, 0.0  ;;  %v4127_v22 = vpop.f32.mrb[40].mxu1 }
 0x1e5   : > { %v6077_v55 = vpop.f32.mrb[49].mxu0  ;;  %3375 = vst.msk [vmem:[%s5867_s6 + $0x98] sm:$0xf] %vm3336_vm5, %v3858_v18  ;;  %v3859_v37 = vpack.c.bf16 %v3055_v34, %v3055_v34  ;;  %v4321_v39 = vadd.f32 %v6027_v6, %v4127_v22  ;;  %v2050_v58 = vpop.f32.mrb[41].mxu1 }
 0x1e6   : > { %v6082_v31 = vpop.f32.mrb[50].mxu0  ;;  %3373 = vst.msk [vmem:[%s5867_s6 + $0x90] sm:$0xf] %vm3336_vm5, %v3856_v4  ;;  %v3857_v11 = vpack.c.bf16 %v3053_v36, %v3053_v36  ;;  %v4322_v14 = vadd.f32 %v6029_v53, %v2050_v58  ;;  %v4128_v56 = vpop.f32.mrb[42].mxu1 }
 0x1e7   : > { %v6087_v19 = vpop.f32.mrb[51].mxu0  ;;  %3376 = vst.msk [vmem:[%s5867_s6 + $0x9c] sm:$0xf] %vm3336_vm5, %v3859_v37  ;;  %v2994_v57 = vadd.f32 %v4321_v39, %v5851_v25  ;;  %v4323_v48 = vadd.f32 %v6034_v45, %v4128_v56  ;;  %v2053_v2 = vpop.f32.mrb[43].mxu1 }
 0x1e8   : > { %3374 = vst.msk [vmem:[%s5867_s6 + $0x94] sm:$0xf] %vm3336_vm5, %v3857_v11  ;;  %v2992_v6 = vadd.f32 %v4322_v14, %v5851_v25  ;;  %v4324_v23 = vadd.f32 %v6039_v47, %v2053_v2 }
 0x1e9   : > { %v3058_v15 = vmax.f32 %v2994_v57, 0.0  ;;  %v2995_v53 = vadd.f32 %v4323_v48, %v5851_v25 }
 0x1ea   : > { %v3056_v0 = vmax.f32 %v2992_v6, 0.0  ;;  %v2993_v9 = vadd.f32 %v4324_v23, %v5851_v25 }
 0x1eb   : > { %v3862_v51 = vpack.c.bf16 %v3058_v15, %v3058_v15  ;;  %v3059_v41 = vmax.f32 %v2995_v53, 0.0 }
 0x1ec   : > { %v6099_v17 = vpop.f32.mrb[52].mxu0  ;;  %v3860_v45 = vpack.c.bf16 %v3056_v0, %v3056_v0  ;;  %v3057_v49 = vmax.f32 %v2993_v9, 0.0  ;;  %v4131_v59 = vpop.f32.mrb[44].mxu1 }
 0x1ed   : > { %v6101_v40 = vpop.f32.mrb[53].mxu0  ;;  %3379 = vst.msk [vmem:[%s5867_s6 + $0xa8] sm:$0xf] %vm3336_vm5, %v3862_v51  ;;  %v3863_v47 = vpack.c.bf16 %v3059_v41, %v3059_v41  ;;  %v4325_v43 = vadd.f32 %v6051_v32, %v4131_v59  ;;  %v2066_v3 = vpop.f32.mrb[45].mxu1 }
 0x1ee   : > { %v6106_v33 = vpop.f32.mrb[54].mxu0  ;;  %3377 = vst.msk [vmem:[%s5867_s6 + $0xa0] sm:$0xf] %vm3336_vm5, %v3860_v45  ;;  %v3861_v52 = vpack.c.bf16 %v3057_v49, %v3057_v49  ;;  %v4326_v63 = vadd.f32 %v6053_v50, %v2066_v3  ;;  %v4132_v26 = vpop.f32.mrb[46].mxu1 }
 0x1ef   : > { %v6111_v21 = vpop.f32.mrb[55].mxu0  ;;  %3380 = vst.msk [vmem:[%s5867_s6 + $0xac] sm:$0xf] %vm3336_vm5, %v3863_v47  ;;  %v2998_v35 = vadd.f32 %v4325_v43, %v5851_v25  ;;  %v4327_v16 = vadd.f32 %v6058_v20, %v4132_v26  ;;  %v2069_v8 = vpop.f32.mrb[47].mxu1 }
 0x1f0   : > { %3378 = vst.msk [vmem:[%s5867_s6 + $0xa4] sm:$0xf] %vm3336_vm5, %v3861_v52  ;;  %v2996_v32 = vadd.f32 %v4326_v63, %v5851_v25  ;;  %v4328_v38 = vadd.f32 %v6063_v44, %v2069_v8 }
 0x1f1   : > { %v3062_v46 = vmax.f32 %v2998_v35, 0.0  ;;  %v2999_v50 = vadd.f32 %v4327_v16, %v5851_v25 }
 0x1f2   : > { %v3060_v42 = vmax.f32 %v2996_v32, 0.0  ;;  %v2997_v5 = vadd.f32 %v4328_v38, %v5851_v25 }
 0x1f3   : > { %v3866_v1 = vpack.c.bf16 %v3062_v46, %v3062_v46  ;;  %v3063_v27 = vmax.f32 %v2999_v50, 0.0 }
 0x1f4   : > { %v4275_v12 = vpop.f32.mrb[56].mxu0  ;;  %v3864_v20 = vpack.c.bf16 %v3060_v42, %v3060_v42  ;;  %v3061_v54 = vmax.f32 %v2997_v5, 0.0  ;;  %v4135_v13 = vpop.f32.mrb[48].mxu1 }
 0x1f5   : > { %v2850_v24 = vpop.f32.mrb[57].mxu0  ;;  %3383 = vst.msk [vmem:[%s5867_s6 + $0xb8] sm:$0xf] %vm3336_vm5, %v3866_v1  ;;  %v3867_v61 = vpack.c.bf16 %v3063_v27, %v3063_v27  ;;  %v4329_v44 = vadd.f32 %v6075_v7, %v4135_v13  ;;  %v2082_v10 = vpop.f32.mrb[49].mxu1 }
 0x1f6   : > { %v4276_v30 = vpop.f32.mrb[58].mxu0  ;;  %3381 = vst.msk [vmem:[%s5867_s6 + $0xb0] sm:$0xf] %vm3336_vm5, %v3864_v20  ;;  %v3865_v62 = vpack.c.bf16 %v3061_v54, %v3061_v54  ;;  %v4330_v28 = vadd.f32 %v6077_v55, %v2082_v10  ;;  %v4136_v60 = vpop.f32.mrb[50].mxu1 }
 0x1f7   : > { %v2853_v29 = vpop.f32.mrb[59].mxu0  ;;  %3384 = vst.msk [vmem:[%s5867_s6 + $0xbc] sm:$0xf] %vm3336_vm5, %v3867_v61  ;;  %v3002_v18 = vadd.f32 %v4329_v44, %v5851_v25  ;;  %v4331_v34 = vadd.f32 %v6082_v31, %v4136_v60  ;;  %v2085_v4 = vpop.f32.mrb[51].mxu1 }
 0x1f8   : > { %3382 = vst.msk [vmem:[%s5867_s6 + $0xb4] sm:$0xf] %vm3336_vm5, %v3865_v62  ;;  %v3000_v7 = vadd.f32 %v4330_v28, %v5851_v25  ;;  %v4332_v36 = vadd.f32 %v6087_v19, %v2085_v4 }
 0x1f9   : > { %v3066_v22 = vmax.f32 %v3002_v18, 0.0  ;;  %v3003_v55 = vadd.f32 %v4331_v34, %v5851_v25 }
 0x1fa   : > { %v3064_v37 = vmax.f32 %v3000_v7, 0.0  ;;  %v3001_v39 = vadd.f32 %v4332_v36, %v5851_v25 }
 0x1fb   : > { %v3870_v58 = vpack.c.bf16 %v3066_v22, %v3066_v22  ;;  %v3067_v11 = vmax.f32 %v3003_v55, 0.0 }
 0x1fc   : > { %v4279_v14 = vpop.f32.mrb[60].mxu0  ;;  %v3868_v31 = vpack.c.bf16 %v3064_v37, %v3064_v37  ;;  %v3065_v56 = vmax.f32 %v3001_v39, 0.0  ;;  %v4139_v57 = vpop.f32.mrb[52].mxu1 }
 0x1fd   : > { %v2866_v48 = vpop.f32.mrb[61].mxu0  ;;  %3387 = vst.msk [vmem:[%s5867_s6 + $0xc8] sm:$0xf] %vm3336_vm5, %v3870_v58  ;;  %v3871_v2 = vpack.c.bf16 %v3067_v11, %v3067_v11  ;;  %v4333_v19 = vadd.f32 %v6099_v17, %v4139_v57  ;;  %v2098_v6 = vpop.f32.mrb[53].mxu1 }
 0x1fe   : > { %v4280_v23 = vpop.f32.mrb[62].mxu0  ;;  %3385 = vst.msk [vmem:[%s5867_s6 + $0xc0] sm:$0xf] %vm3336_vm5, %v3868_v31  ;;  %v3869_v15 = vpack.c.bf16 %v3065_v56, %v3065_v56  ;;  %v4334_v53 = vadd.f32 %v6101_v40, %v2098_v6  ;;  %v4140_v0 = vpop.f32.mrb[54].mxu1 }
 0x1ff   : > { %v2869_v9 = vpop.f32.mrb[63].mxu0  ;;  %3388 = vst.msk [vmem:[%s5867_s6 + $0xcc] sm:$0xf] %vm3336_vm5, %v3871_v2  ;;  %v3006_v51 = vadd.f32 %v4333_v19, %v5851_v25  ;;  %v4335_v41 = vadd.f32 %v6106_v33, %v4140_v0  ;;  %v2101_v45 = vpop.f32.mrb[55].mxu1 }
 0x200   : > { %3386 = vst.msk [vmem:[%s5867_s6 + $0xc4] sm:$0xf] %vm3336_vm5, %v3869_v15  ;;  %v3004_v17 = vadd.f32 %v4334_v53, %v5851_v25  ;;  %v4336_v49 = vadd.f32 %v6111_v21, %v2101_v45 }
 0x201   : > { %v3070_v59 = vmax.f32 %v3006_v51, 0.0  ;;  %v3007_v40 = vadd.f32 %v4335_v41, %v5851_v25 }
 0x202   : > { %v3068_v47 = vmax.f32 %v3004_v17, 0.0  ;;  %v3005_v43 = vadd.f32 %v4336_v49, %v5851_v25 }
 0x203   : > { %v3874_v3 = vpack.c.bf16 %v3070_v59, %v3070_v59  ;;  %v3071_v52 = vmax.f32 %v3007_v40, 0.0 }
 0x204   : > { %v3872_v63 = vpack.c.bf16 %v3068_v47, %v3068_v47  ;;  %v3069_v33 = vmax.f32 %v3005_v43, 0.0  ;;  %v4143_v26 = vpop.f32.mrb[56].mxu1 }
 0x205   : > { %3391 = vst.msk [vmem:[%s5867_s6 + $0xd8] sm:$0xf] %vm3336_vm5, %v3874_v3  ;;  %v3875_v35 = vpack.c.bf16 %v3071_v52, %v3071_v52  ;;  %v4337_v16 = vadd.f32 %v4275_v12, %v4143_v26  ;;  %v2114_v8 = vpop.f32.mrb[57].mxu1 }
 0x206   : > { %3389 = vst.msk [vmem:[%s5867_s6 + $0xd0] sm:$0xf] %vm3336_vm5, %v3872_v63  ;;  %v3873_v21 = vpack.c.bf16 %v3069_v33, %v3069_v33  ;;  %v4338_v32 = vadd.f32 %v2850_v24, %v2114_v8  ;;  %v4144_v38 = vpop.f32.mrb[58].mxu1 }
 0x207   : > { %3392 = vst.msk [vmem:[%s5867_s6 + $0xdc] sm:$0xf] %vm3336_vm5, %v3875_v35  ;;  %v3010_v46 = vadd.f32 %v4337_v16, %v5851_v25  ;;  %v4339_v50 = vadd.f32 %v4276_v30, %v4144_v38  ;;  %v2117_v42 = vpop.f32.mrb[59].mxu1 }
 0x208   : > { %3390 = vst.msk [vmem:[%s5867_s6 + $0xd4] sm:$0xf] %vm3336_vm5, %v3873_v21  ;;  %v3008_v5 = vadd.f32 %v4338_v32, %v5851_v25  ;;  %v4340_v1 = vadd.f32 %v2853_v29, %v2117_v42 }
 0x209   : > { %v3074_v27 = vmax.f32 %v3010_v46, 0.0  ;;  %v3011_v12 = vadd.f32 %v4339_v50, %v5851_v25 }
 0x20a   : > { %v3072_v20 = vmax.f32 %v3008_v5, 0.0  ;;  %v3009_v54 = vadd.f32 %v4340_v1, %v5851_v25 }
 0x20b   : > { %v3878_v13 = vpack.c.bf16 %v3074_v27, %v3074_v27  ;;  %v3075_v24 = vmax.f32 %v3011_v12, 0.0 }
 0x20c   : > { %v3876_v61 = vpack.c.bf16 %v3072_v20, %v3072_v20  ;;  %v3073_v44 = vmax.f32 %v3009_v54, 0.0  ;;  %v4147_v10 = vpop.f32.mrb[60].mxu1 }
 0x20d   : > { %3395 = vst.msk [vmem:[%s5867_s6 + $0xe8] sm:$0xf] %vm3336_vm5, %v3878_v13  ;;  %v3879_v30 = vpack.c.bf16 %v3075_v24, %v3075_v24  ;;  %v4341_v62 = vadd.f32 %v4279_v14, %v4147_v10  ;;  %v2130_v28 = vpop.f32.mrb[61].mxu1 }
 0x20e   : > { %3393 = vst.msk [vmem:[%s5867_s6 + $0xe0] sm:$0xf] %vm3336_vm5, %v3876_v61  ;;  %v3877_v60 = vpack.c.bf16 %v3073_v44, %v3073_v44  ;;  %v4342_v29 = vadd.f32 %v2866_v48, %v2130_v28  ;;  %v4148_v18 = vpop.f32.mrb[62].mxu1 }
 0x20f   : > { %3396 = vst.msk [vmem:[%s5867_s6 + $0xec] sm:$0xf] %vm3336_vm5, %v3879_v30  ;;  %v3014_v34 = vadd.f32 %v4341_v62, %v5851_v25  ;;  %v4343_v4 = vadd.f32 %v4280_v23, %v4148_v18  ;;  %v2133_v7 = vpop.f32.mrb[63].mxu1 }
 0x210   : > { %3394 = vst.msk [vmem:[%s5867_s6 + $0xe4] sm:$0xf] %vm3336_vm5, %v3877_v60  ;;  %v3012_v36 = vadd.f32 %v4342_v29, %v5851_v25  ;;  %v4344_v22 = vadd.f32 %v2869_v9, %v2133_v7 }
 0x211   : > { %v3078_v55 = vmax.f32 %v3014_v34, 0.0  ;;  %v3015_v37 = vadd.f32 %v4343_v4, %v5851_v25 }
 0x212   : > { %v3076_v39 = vmax.f32 %v3012_v36, 0.0  ;;  %v3013_v58 = vadd.f32 %v4344_v22, %v5851_v25 }
 0x213   : > { %v3882_v11 = vpack.c.bf16 %v3078_v55, %v3078_v55  ;;  %v3079_v14 = vmax.f32 %v3015_v37, 0.0 }
 0x214   : > { %v3880_v31 = vpack.c.bf16 %v3076_v39, %v3076_v39  ;;  %v3077_v56 = vmax.f32 %v3013_v58, 0.0 }
 0x215   : > { %3399 = vst.msk [vmem:[%s5867_s6 + $0xf8] sm:$0xf] %vm3336_vm5, %v3882_v11  ;;  %v3883_v57 = vpack.c.bf16 %v3079_v14, %v3079_v14 }
 0x216   : > { %3397 = vst.msk [vmem:[%s5867_s6 + $0xf0] sm:$0xf] %vm3336_vm5, %v3880_v31  ;;  %v3881_v25 = vpack.c.bf16 %v3077_v56, %v3077_v56 }
 0x217   : > { %3400 = vst.msk [vmem:[%s5867_s6 + $0xfc] sm:$0xf] %vm3336_vm5, %v3883_v57 }
 0x218   : > { %3398 = vst.msk [vmem:[%s5867_s6 + $0xf4] sm:$0xf] %vm3336_vm5, %v3881_v25 }
 0x219   : > { %4606 = shalt.err (!%p4603_p9)
}
 0x21a   : > { %s4607_s25 = scalar_lea.hbm %s6187_s8, 4096  ;;  %s4611_s6 = scalar_lea.hbm %s6255_s4, 16384 }
 0x21b   : > { %p4608_p10 = scmp.ne.s32.totalorder %s6187_s8, %s4607_s25  ;;  %p4612_p13 = scmp.lt.u32.totalorder %s6187_s8, %s6255_s4 }
 0x21c   : > { %p4613_p0 = scmp.lt.u32.totalorder %s4611_s6, %s4607_s25  ;;  %p4615_p2 = scmp.lt.u32.totalorder %s4607_s25, %s6187_s8 }
 0x21d   : > { %p4609_p11 = pnand %p4608_p10, %p4768_p3 }
 0x21e   : > { %p4614_p1 = por %p4613_p0, %p4612_p13 }
 0x21f   : > { %p4610_p12 = pneg %p4609_p11 }
 0x220   : > { %p4616_p4 = por %p4615_p2, %p4614_p1 }
 0x222   : > { %p4617_p5 = pnand %p4616_p4, %p4610_p12 }
 0x224   : > { %4620 = shalt.err (!%p4617_p5)
}
 0x225   : > { %s4690_s18 = smov 64   ;;  %s4691_s19 = smov 4  }
 0x226   : > { %4480 = dma.vmem_to_hbm [thread:$0]  (%p4768_p3), %s6189_s11, 4096, %s6187_s8, %s6199_s13, %s4690_s18, %s4690_s18, %s4691_s19  }
 0x227 PF: > { %p4486_p6 = scmp.ge.s32.totalorder %s4687_s22, 2  ;;  %s3433_s12 = sand.u32 1, %s4659_s15  }
 0x228   : > { %s3434_s26 = scalar_lea.sflag [#allocation3], %s3433_s12 }
 0x229   : > { %p4483_p7 = pnand %p4486_p6, %p4777_p8 }
 0x22b   : > { %4654 = dma.done.wait (!%p4483_p7), %s3434_s26, 4096  }
 0x22c   : > { %4656 = vsyncadd (!%p4483_p7), %s3434_s26, 4294963200  ;;  %s17_s22 = sadd.s32 1, %s4687_s22   ;;  %s6361_s28 = sld [smem:[#allocation5_spill]] }
 0x22d   : > { %p14_p9 = scmp.ge.s32.totalorder %s17_s22, 6   ;;  %s6362_s11 = sld [smem:[#allocation6_spill]] }
 0x22e   : > { %s6363_s15 = smov %s4663_s16  ;;  %s6364_s16 = smov %s4667_s17 }
 0x22f   : > { %s6365_s17 = smov %s4786_s7  ;;  %s6366_s18 = smov %s4679_s20 }
 0x230   : > { %s6367_s19 = smov %s4683_s21  ;;  %16 = sbr.rel (!%p14_p9) target bundleno = 5 (0x5), region = 77 }
 0x232   : > { %s6368_s20 = smov %s6361_s28 }
 0x233   : > { %s6369_s21 = smov %s6362_s11 }
 0x237   :  { %3439 = vsyncpa [#allocation3], 1 }
 0x238   :  { %3441 = vsyncpa [#allocation3 + $0x1], 1 }

</bundles_post_ra>
